<compile_context>
chip_gen: v7x
topology: tpu7x:2x2x1
jax: 0.10.0
libtpu: 0.0.40
codegen_flags: <defaults>
</compile_context>

<pallas_src>
import functools

import jax
import jax.numpy as jnp
from jax.experimental import pallas as pl
from jax.experimental.pallas import tpu as pltpu

LANE = 128                                   # lane width: feature/hidden/class pad
_BUFFERED = getattr(pl, "Buffered", None)    # single-buffering of constant operands


def _round_up(x, m):
    return ((x + m - 1) // m) * m


def _vmem_capacity_bytes():
    try:
        return int(pltpu.get_tpu_info().vmem_capacity_bytes)
    except Exception:
        return 64 << 20                       # conservative (v7x) fallback


# ---------------------------------------------------------------------------
# Kernels
# ---------------------------------------------------------------------------
def _gin_mlp_block(s_ref, x_ref, wa_ref, ba_ref, wb_ref, bb_ref, *, eps, tm):
    """GIN aggregation + 2-layer MLP + outer ReLU for one block of TM node rows.

    Returns f32 [tm, f_pad].  Dropout (p=0.5) is identity in eval mode.
    """
    # agg_i = sum_{j->i} x_j + (1+eps) * x_i.
    # A row block is int8 multiplicities; upcast to bf16 for the MXU, accumulate f32.
    agg = jnp.dot(s_ref[...].astype(jnp.bfloat16), x_ref[...],
                  preferred_element_type=jnp.float32)
    row0 = pl.multiple_of(pl.program_id(0) * tm, tm)
    x_rows = x_ref[pl.ds(row0, tm), :].astype(jnp.float32)
    agg = agg + jnp.float32(1.0 + eps) * x_rows
    # MLP: Linear -> ReLU -> Linear, then the module's outer F.relu.
    h = jnp.dot(agg.astype(jnp.bfloat16), wa_ref[...],
                preferred_element_type=jnp.float32)
    h = jnp.maximum(h + ba_ref[...], 0.0)
    h = jnp.dot(h.astype(jnp.bfloat16), wb_ref[...],
                preferred_element_type=jnp.float32)
    h = h + bb_ref[...]
    return jnp.maximum(h, 0.0)


def gin_conv_kernel(s_ref, x_ref, wa_ref, ba_ref, wb_ref, bb_ref, o_ref, *, eps, tm):
    """Layer 1: emit the bf16 hidden block (consumed as resident X by layer 2)."""
    h = _gin_mlp_block(s_ref, x_ref, wa_ref, ba_ref, wb_ref, bb_ref, eps=eps, tm=tm)
    o_ref[...] = h.astype(jnp.bfloat16)


def gin_conv_pool_kernel(s_ref, x_ref, pt_ref, wa_ref, ba_ref, wb_ref, bb_ref,
                         o_ref, *, eps, tm):
    """Layer 2 + fused mean-pool numerator: emit per-block partial pooled sums."""
    h = _gin_mlp_block(s_ref, x_ref, wa_ref, ba_ref, wb_ref, bb_ref, eps=eps, tm=tm)
    # partial[g, f] = sum_{rows in block} pool_t[row, g] * h[row, f]
    part = jax.lax.dot_general(pt_ref[...], h.astype(jnp.bfloat16),
                               (((0,), (0,)), ((), ())),
                               preferred_element_type=jnp.float32)
    o_ref[0] = part


def head_kernel(parts_ref, cnt_ref, wl_ref, bl_ref, o_ref, *, num_classes):
    """Reduce pooled partials, divide by counts, final Linear, masked log_softmax."""
    pooled = jnp.sum(parts_ref[...], axis=0)                       # [g_pad, f_pad] f32
    pooled = pooled / jnp.maximum(cnt_ref[...], 1.0)               # mean pooling
    z = jnp.dot(pooled, wl_ref[...], preferred_element_type=jnp.float32) + bl_ref[...]
    col = jax.lax.broadcasted_iota(jnp.int32, z.shape, 1)
    z = jnp.where(col < num_classes, z, jnp.float32(-1e30))        # mask padded classes
    m = jnp.max(z, axis=-1, keepdims=True)
    s = z - m
    lse = jnp.log(jnp.sum(jnp.exp(s), axis=-1, keepdims=True))
    o_ref[...] = s - lse


# ---------------------------------------------------------------------------
# Tiling / VMEM budgets (generation aware)
# ---------------------------------------------------------------------------
def _choose_tiling(n, vmem_cap):
    """Returns (n_pad, tm): n padded to a multiple of 128 (>= 256 so the parallel grid
    has >= 2 steps), tm the largest 128-multiple row tile that divides n_pad, leaves
    >= 2 blocks, and fits the streamed double-buffered blocks in the VMEM budget."""
    n_pad = max(256, _round_up(n, 128))
    stream_budget = max(vmem_cap // 3, 8 << 20)     # ~42 MiB v5e/v6e, ~21 MiB v7x
    tm = 128
    for cand in (2048, 1024, 512, 256):
        if cand * 2 <= n_pad and n_pad % cand == 0:
            if 2 * (cand * n_pad + cand * LANE * 2) <= stream_budget:
                tm = cand
                break
    return n_pad, tm


def _vmem_limit_bytes(tm, n_pad, f_pad, cap):
    s_blk = tm * n_pad                              # int8 A row block
    o_blk = tm * f_pad * 2                          # bf16 output block (layer 1)
    resident = n_pad * f_pad * 2 + 2 * (f_pad * f_pad * 2) + 2 * (f_pad * 4)
    # Budget two buffers for the resident operands in case single-buffering falls back.
    est = 2 * resident + 2 * (s_blk + o_blk) + (4 << 20)
    # TODO(synk): when resident X itself overflows VMEM (very large graphs, esp. on
    # v7x's 64 MiB), add a second "arbitrary" grid axis over the contraction dim and
    # stream X K-blocks into an f32 accumulator instead of relying on this cap.
    return int(min(max(est, 16 << 20), int(cap * 0.9)))


def _const_spec(shape, single_buffer):
    """BlockSpec for an operand whose block never changes across the grid."""
    index_map = lambda i: (0,) * len(shape)
    if single_buffer and _BUFFERED is not None:
        return pl.BlockSpec(shape, index_map, pipeline_mode=_BUFFERED(1))
    return pl.BlockSpec(shape, index_map)


def _run_with_optional_single_buffering(build, args):
    if _BUFFERED is None:
        return build(False)(*args)
    try:
        return build(True)(*args)
    except Exception:
        # pipeline_mode single-buffering unsupported on this jax/libtpu; fall back.
        return build(False)(*args)


# ---------------------------------------------------------------------------
# pallas_call wrappers
# ---------------------------------------------------------------------------
def gin_conv(a8, x_pad, wa, ba, wb, bb, *, tm, eps, vmem_cap):
    n_pad, f_pad = x_pad.shape
    nblk = n_pad // tm
    limit = _vmem_limit_bytes(tm, n_pad, f_pad, vmem_cap)

    def build(single_buffer):
        return pl.pallas_call(
            functools.partial(gin_conv_kernel, eps=eps, tm=tm),
            out_shape=jax.ShapeDtypeStruct((n_pad, f_pad), jnp.bfloat16),
            grid=(nblk,),
            in_specs=[
                pl.BlockSpec((tm, n_pad), lambda i: (i, 0)),       # A rows (int8 stream)
                _const_spec((n_pad, f_pad), single_buffer),        # X (resident)
                _const_spec((f_pad, f_pad), single_buffer),        # W_a
                _const_spec((1, f_pad), single_buffer),            # b_a
                _const_spec((f_pad, f_pad), single_buffer),        # W_b
                _const_spec((1, f_pad), single_buffer),            # b_b
            ],
            out_specs=pl.BlockSpec((tm, f_pad), lambda i: (i, 0)),
            compiler_params=pltpu.CompilerParams(
                dimension_semantics=("parallel",),
                vmem_limit_bytes=limit,
            ),
        )

    return _run_with_optional_single_buffering(build, (a8, x_pad, wa, ba, wb, bb))


def gin_conv_pool(a8, x_pad, pool_t, wa, ba, wb, bb, *, tm, eps, vmem_cap):
    n_pad, f_pad = x_pad.shape
    g_pad = pool_t.shape[1]
    nblk = n_pad // tm
    limit = _vmem_limit_bytes(tm, n_pad, f_pad, vmem_cap)

    def build(single_buffer):
        return pl.pallas_call(
            functools.partial(gin_conv_pool_kernel, eps=eps, tm=tm),
            out_shape=jax.ShapeDtypeStruct((nblk, g_pad, f_pad), jnp.float32),
            grid=(nblk,),
            in_specs=[
                pl.BlockSpec((tm, n_pad), lambda i: (i, 0)),       # A rows (int8 stream)
                _const_spec((n_pad, f_pad), single_buffer),        # H1 (resident)
                pl.BlockSpec((tm, g_pad), lambda i: (i, 0)),       # pool^T rows (stream)
                _const_spec((f_pad, f_pad), single_buffer),        # W_a
                _const_spec((1, f_pad), single_buffer),            # b_a
                _const_spec((f_pad, f_pad), single_buffer),        # W_b
                _const_spec((1, f_pad), single_buffer),            # b_b
            ],
            out_specs=pl.BlockSpec((1, g_pad, f_pad), lambda i: (i, 0, 0)),
            compiler_params=pltpu.CompilerParams(
                dimension_semantics=("parallel",),
                vmem_limit_bytes=limit,
            ),
        )

    return _run_with_optional_single_buffering(
        build, (a8, x_pad, pool_t, wa, ba, wb, bb))


def gin_head(parts, counts, wl, bl, *, num_classes):
    g_pad = counts.shape[0]
    c_pad = wl.shape[1]
    vmem = pl.BlockSpec(memory_space=pltpu.MemorySpace.VMEM)
    return pl.pallas_call(
        functools.partial(head_kernel, num_classes=num_classes),
        out_shape=jax.ShapeDtypeStruct((g_pad, c_pad), jnp.float32),
        in_specs=[vmem] * 4,
        out_specs=vmem,
    )(parts, counts, wl, bl)


# ---------------------------------------------------------------------------
# Host-side glue and the full forward
# ---------------------------------------------------------------------------
def _pad2(a, rows, cols, dtype):
    out = jnp.zeros((rows, cols), dtype)
    return out.at[: a.shape[0], : a.shape[1]].set(a.astype(dtype))


def _build_dense_operands(edge_index, batch, n, n_pad, num_graphs, g_pad):
    """int8 adjacency multiplicities (built directly in the compact dtype), bf16 0/1
    transposed pooling one-hot, and f32 per-graph node counts."""
    src, dst = edge_index[0], edge_index[1]
    # TODO(synk): edge multiplicity > 127 (extreme multigraphs) would overflow int8.
    a8 = jnp.zeros((n_pad, n_pad), jnp.int8).at[dst, src].add(jnp.int8(1))
    onehot = batch[:, None] == jnp.arange(num_graphs, dtype=jnp.int32)[None, :]  # [N,G]
    pool_t = jnp.zeros((n_pad, g_pad), jnp.bfloat16)
    pool_t = pool_t.at[:n, :num_graphs].set(onehot.astype(jnp.bfloat16))
    counts = jnp.zeros((g_pad, 1), jnp.float32)
    counts = counts.at[:num_graphs, 0].set(jnp.sum(onehot.astype(jnp.float32), axis=0))
    return a8, pool_t, counts


def gin_forward(x, edge_index, batch, params, *, num_graphs, num_classes, eps=0.0):
    n = x.shape[0]
    vmem_cap = _vmem_capacity_bytes()
    n_pad, tm = _choose_tiling(n, vmem_cap)
    g_pad = _round_up(num_graphs, 8)

    a8, pool_t, counts = _build_dense_operands(edge_index, batch, n, n_pad,
                                               num_graphs, g_pad)
    x_pad = _pad2(x, n_pad, LANE, jnp.bfloat16)

    def w_bf(name):
        return _pad2(params[name], LANE, LANE, jnp.bfloat16)

    def b_f32(name):
        return _pad2(params[name][None, :], 1, LANE, jnp.float32)

    h1 = gin_conv(a8, x_pad, w_bf("w1a"), b_f32("b1a"), w_bf("w1b"), b_f32("b1b"),
                  tm=tm, eps=eps, vmem_cap=vmem_cap)
    parts = gin_conv_pool(a8, h1, pool_t,
                          w_bf("w2a"), b_f32("b2a"), w_bf("w2b"), b_f32("b2b"),
                          tm=tm, eps=eps, vmem_cap=vmem_cap)

    wl = _pad2(params["wl"], LANE, LANE, jnp.float32)
    bl = _pad2(params["bl"][None, :], 1, LANE, jnp.float32)
    out = gin_head(parts, counts, wl, bl, num_classes=num_classes)
    return out[:num_graphs, :num_classes]


def gin_reference(x, edge_index, batch, params, *, num_graphs, num_classes, eps=0.0):
    """Plain-JAX reference mirroring the kernel numerics (bf16 operands, f32 acc).
    Mean-pool before the final Linear == Linear before mean-pool (affine + mean)."""
    n = x.shape[0]
    src, dst = edge_index[0], edge_index[1]
    a = jnp.zeros((n, n), jnp.float32).at[dst, src].add(1.0).astype(jnp.bfloat16)
    x_bf = x.astype(jnp.bfloat16)
    onehot = (batch[:, None] == jnp.arange(num_graphs, dtype=jnp.int32)[None, :]
              ).astype(jnp.bfloat16)                                # [N, G]
    counts = jnp.maximum(
        jnp.sum(onehot.astype(jnp.float32), axis=0)[:, None], 1.0)  # [G, 1]

    def conv(h_bf, wa, ba, wb, bb):
        agg = jnp.dot(a, h_bf, preferred_element_type=jnp.float32) \
            + jnp.float32(1.0 + eps) * h_bf.astype(jnp.float32)
        z = jnp.dot(agg.astype(jnp.bfloat16), wa.astype(jnp.bfloat16),
                    preferred_element_type=jnp.float32) + ba
        z = jnp.maximum(z, 0.0)
        z = jnp.dot(z.astype(jnp.bfloat16), wb.astype(jnp.bfloat16),
                    preferred_element_type=jnp.float32) + bb
        return jnp.maximum(z, 0.0)

    h1 = conv(x_bf, params["w1a"], params["b1a"],
              params["w1b"], params["b1b"]).astype(jnp.bfloat16)
    h2 = conv(h1, params["w2a"], params["b2a"], params["w2b"], params["b2b"])
    pooled = jax.lax.dot_general(onehot, h2.astype(jnp.bfloat16),
                                 (((0,), (0,)), ((), ())),
                                 preferred_element_type=jnp.float32) / counts
    z = jnp.dot(pooled, params["wl"], preferred_element_type=jnp.float32) + params["bl"]
    return jax.nn.log_softmax(z, axis=1)


# ---------------------------------------------------------------------------
# Example run
# ---------------------------------------------------------------------------
if __name__ == "__main__":
    key = jax.random.PRNGKey(0)
    ks = jax.random.split(key, 12)

    # Small synthetic batched graph: 2 graphs x 16 nodes.
    NUM_GRAPHS = 2
    NODES_PER_GRAPH = 16
    N = NUM_GRAPHS * NODES_PER_GRAPH          # 32 nodes total
    F_IN = 16                                  # num_feature
    HIDDEN = 32                                # hidden_channels
    CLASSES = 8                                # num_classes
    E_PER_GRAPH = 32                           # directed edges per graph

    x = jax.random.normal(ks[0], (N, F_IN), dtype=jnp.float32)
    batch = jnp.repeat(jnp.arange(NUM_GRAPHS, dtype=jnp.int32), NODES_PER_GRAPH)

    # Random edges, kept within their own graph (PyG batching semantics).
    e_local = jax.random.randint(ks[1], (NUM_GRAPHS, 2, E_PER_GRAPH), 0,
                                 NODES_PER_GRAPH, dtype=jnp.int32)
    offsets = (jnp.arange(NUM_GRAPHS, dtype=jnp.int32) * NODES_PER_GRAPH)[:, None, None]
    edge_index = (e_local + offsets).transpose(1, 0, 2).reshape(2, -1)  # [2, 64]

    def glorot(k, shape):
        return jax.random.normal(k, shape, dtype=jnp.float32) / jnp.sqrt(
            jnp.float32(shape[0]))

    params = {
        "w1a": glorot(ks[2], (F_IN, HIDDEN)),
        "b1a": jax.random.normal(ks[3], (HIDDEN,), jnp.float32) * 0.01,
        "w1b": glorot(ks[4], (HIDDEN, HIDDEN)),
        "b1b": jax.random.normal(ks[5], (HIDDEN,), jnp.float32) * 0.01,
        "w2a": glorot(ks[6], (HIDDEN, HIDDEN)),
        "b2a": jax.random.normal(ks[7], (HIDDEN,), jnp.float32) * 0.01,
        "w2b": glorot(ks[8], (HIDDEN, HIDDEN)),
        "b2b": jax.random.normal(ks[9], (HIDDEN,), jnp.float32) * 0.01,
        "wl": glorot(ks[10], (HIDDEN, CLASSES)),
        "bl": jax.random.normal(ks[11], (CLASSES,), jnp.float32) * 0.01,
    }

    out = gin_forward(x, edge_index, batch, params,
                      num_graphs=NUM_GRAPHS, num_classes=CLASSES)
    out = jax.block_until_ready(out)

    ref = gin_reference(x, edge_index, batch, params,
                        num_graphs=NUM_GRAPHS, num_classes=CLASSES)
    ref = jax.block_until_ready(ref)

    assert out.shape == (NUM_GRAPHS, CLASSES)
    assert bool(jnp.all(jnp.isfinite(out)))
    assert jnp.allclose(out, ref, atol=2e-3, rtol=2e-3), (
        f"max abs diff = {jnp.max(jnp.abs(out - ref))}")

    print("KERNEL_OK")
</pallas_src>

<mosaic_0001>
module attributes {stable_mosaic.version = 11 : i64} {
  func.func @gin_conv_kernel(%arg0: i32, %arg1: memref<128x256xi8, #tpu.memory_space<vmem>>, %arg2: memref<256x128xbf16, #tpu.memory_space<vmem>>, %arg3: memref<128x128xbf16, #tpu.memory_space<vmem>>, %arg4: memref<1x128xf32, #tpu.memory_space<vmem>>, %arg5: memref<128x128xbf16, #tpu.memory_space<vmem>>, %arg6: memref<1x128xf32, #tpu.memory_space<vmem>>, %arg7: memref<128x128xbf16, #tpu.memory_space<vmem>>) attributes {dimension_semantics = [#tpu.dimension_semantics<parallel>], iteration_bounds = array<i64: 2>, scalar_prefetch = 0 : i64, scratch_operands = 0 : i64, tpu.core_type = #tpu.core_type<tc>, window_params = [{transform_indices = @transform_0, window_bounds = array<i64: 128, 256>}, {pipeline_mode = #tpu.pipeline_mode<synchronous>, transform_indices = @transform_1, window_bounds = array<i64: 256, 128>}, {pipeline_mode = #tpu.pipeline_mode<synchronous>, transform_indices = @transform_2, window_bounds = array<i64: 128, 128>}, {pipeline_mode = #tpu.pipeline_mode<synchronous>, transform_indices = @transform_3, window_bounds = array<i64: 1, 128>}, {pipeline_mode = #tpu.pipeline_mode<synchronous>, transform_indices = @transform_4, window_bounds = array<i64: 128, 128>}, {pipeline_mode = #tpu.pipeline_mode<synchronous>, transform_indices = @transform_5, window_bounds = array<i64: 1, 128>}, {transform_indices = @transform_6, window_bounds = array<i64: 128, 128>}]} {
    %c0 = arith.constant 0 : index
    %c0_0 = arith.constant 0 : index
    %0 = vector.load %arg1[%c0, %c0_0] : memref<128x256xi8, #tpu.memory_space<vmem>>, vector<128x256xi8>
    %1 = arith.sitofp %0 : vector<128x256xi8> to vector<128x256xbf16>
    %c0_1 = arith.constant 0 : index
    %c0_2 = arith.constant 0 : index
    %2 = vector.load %arg2[%c0_1, %c0_2] : memref<256x128xbf16, #tpu.memory_space<vmem>>, vector<256x128xbf16>
    %cst = arith.constant dense<0.000000e+00> : vector<128x128xf32>
    %3 = tpu.matmul %1, %2, %cst {dimension_numbers = #tpu.dot_dimension_numbers<[1], [0], [0], [1], [0, 0, 1, 1], [], []>} : vector<128x256xbf16>, vector<256x128xbf16>, vector<128x128xf32> -> vector<128x128xf32>
    %c128_i32 = arith.constant 128 : i32
    %4 = arith.muli %arg0, %c128_i32 : i32
    %5 = tpu.assume_multiple %4, 128 : i32
    %6 = arith.index_cast %5 : i32 to index
    %c0_3 = arith.constant 0 : index
    %7 = vector.load %arg2[%6, %c0_3] : memref<256x128xbf16, #tpu.memory_space<vmem>>, vector<128x128xbf16>
    %8 = arith.extf %7 : vector<128x128xbf16> to vector<128x128xf32>
    %cst_4 = arith.constant 1.000000e+00 : f32
    %9 = vector.broadcast %cst_4 : f32 to vector<128x128xf32>
    %10 = arith.mulf %9, %8 : vector<128x128xf32>
    %11 = arith.addf %3, %10 : vector<128x128xf32>
    %12 = arith.truncf %11 : vector<128x128xf32> to vector<128x128xbf16>
    %c0_5 = arith.constant 0 : index
    %c0_6 = arith.constant 0 : index
    %13 = vector.load %arg3[%c0_5, %c0_6] : memref<128x128xbf16, #tpu.memory_space<vmem>>, vector<128x128xbf16>
    %cst_7 = arith.constant dense<0.000000e+00> : vector<128x128xf32>
    %14 = tpu.matmul %12, %13, %cst_7 {dimension_numbers = #tpu.dot_dimension_numbers<[1], [0], [0], [1], [0, 0, 1, 1], [], []>} : vector<128x128xbf16>, vector<128x128xbf16>, vector<128x128xf32> -> vector<128x128xf32>
    %c0_8 = arith.constant 0 : index
    %c0_9 = arith.constant 0 : index
    %15 = vector.load %arg4[%c0_8, %c0_9] : memref<1x128xf32, #tpu.memory_space<vmem>>, vector<1x128xf32>
    %16 = vector.broadcast %15 : vector<1x128xf32> to vector<128x128xf32>
    %17 = arith.addf %14, %16 : vector<128x128xf32>
    %cst_10 = arith.constant 0.000000e+00 : f32
    %18 = vector.broadcast %cst_10 : f32 to vector<128x128xf32>
    %19 = arith.maximumf %17, %18 : vector<128x128xf32>
    %20 = arith.truncf %19 : vector<128x128xf32> to vector<128x128xbf16>
    %c0_11 = arith.constant 0 : index
    %c0_12 = arith.constant 0 : index
    %21 = vector.load %arg5[%c0_11, %c0_12] : memref<128x128xbf16, #tpu.memory_space<vmem>>, vector<128x128xbf16>
    %cst_13 = arith.constant dense<0.000000e+00> : vector<128x128xf32>
    %22 = tpu.matmul %20, %21, %cst_13 {dimension_numbers = #tpu.dot_dimension_numbers<[1], [0], [0], [1], [0, 0, 1, 1], [], []>} : vector<128x128xbf16>, vector<128x128xbf16>, vector<128x128xf32> -> vector<128x128xf32>
    %c0_14 = arith.constant 0 : index
    %c0_15 = arith.constant 0 : index
    %23 = vector.load %arg6[%c0_14, %c0_15] : memref<1x128xf32, #tpu.memory_space<vmem>>, vector<1x128xf32>
    %24 = vector.broadcast %23 : vector<1x128xf32> to vector<128x128xf32>
    %25 = arith.addf %22, %24 : vector<128x128xf32>
    %cst_16 = arith.constant 0.000000e+00 : f32
    %26 = vector.broadcast %cst_16 : f32 to vector<128x128xf32>
    %27 = arith.maximumf %25, %26 : vector<128x128xf32>
    %28 = arith.truncf %27 : vector<128x128xf32> to vector<128x128xbf16>
    %c0_17 = arith.constant 0 : index
    %c0_18 = arith.constant 0 : index
    %29 = vector.load %arg7[%c0_17, %c0_18] : memref<128x128xbf16, #tpu.memory_space<vmem>>, vector<128x128xbf16>
    tpu.vector_store %arg7[%c0_17, %c0_18], %28 {strides = array<i32>} : memref<128x128xbf16, #tpu.memory_space<vmem>>, vector<128x128xbf16>,
    return
  }
  func.func @transform_0(%arg0: i32) -> (i32, i32) {
    %c0_i32 = arith.constant 0 : i32
    %c0_i32_0 = arith.constant 0 : i32
    return %arg0, %c0_i32 : i32, i32
  }
  func.func @transform_1(%arg0: i32) -> (i32, i32) {
    %c0_i32 = arith.constant 0 : i32
    %c0_i32_0 = arith.constant 0 : i32
    %c0_i32_1 = arith.constant 0 : i32
    return %c0_i32, %c0_i32_0 : i32, i32
  }
  func.func @transform_2(%arg0: i32) -> (i32, i32) {
    %c0_i32 = arith.constant 0 : i32
    %c0_i32_0 = arith.constant 0 : i32
    %c0_i32_1 = arith.constant 0 : i32
    return %c0_i32, %c0_i32_0 : i32, i32
  }
  func.func @transform_3(%arg0: i32) -> (i32, i32) {
    %c0_i32 = arith.constant 0 : i32
    %c0_i32_0 = arith.constant 0 : i32
    %c0_i32_1 = arith.constant 0 : i32
    return %c0_i32, %c0_i32_0 : i32, i32
  }
  func.func @transform_4(%arg0: i32) -> (i32, i32) {
    %c0_i32 = arith.constant 0 : i32
    %c0_i32_0 = arith.constant 0 : i32
    %c0_i32_1 = arith.constant 0 : i32
    return %c0_i32, %c0_i32_0 : i32, i32
  }
  func.func @transform_5(%arg0: i32) -> (i32, i32) {
    %c0_i32 = arith.constant 0 : i32
    %c0_i32_0 = arith.constant 0 : i32
    %c0_i32_1 = arith.constant 0 : i32
    return %c0_i32, %c0_i32_0 : i32, i32
  }
  func.func @transform_6(%arg0: i32) -> (i32, i32) {
    %c0_i32 = arith.constant 0 : i32
    %c0_i32_0 = arith.constant 0 : i32
    return %arg0, %c0_i32 : i32, i32
  }
}

module attributes {stable_mosaic.version = 11 : i64} {
  func.func @gin_conv_kernel(%arg0: i32, %arg1: memref<128x256xi8, #tpu.memory_space<vmem>>, %arg2: memref<256x128xbf16, #tpu.memory_space<vmem>>, %arg3: memref<128x128xbf16, #tpu.memory_space<vmem>>, %arg4: memref<1x128xf32, #tpu.memory_space<vmem>>, %arg5: memref<128x128xbf16, #tpu.memory_space<vmem>>, %arg6: memref<1x128xf32, #tpu.memory_space<vmem>>, %arg7: memref<128x128xbf16, #tpu.memory_space<vmem>>) attributes {dimension_semantics = [#tpu.dimension_semantics<parallel>], iteration_bounds = array<i64: 2>, scalar_prefetch = 0 : i64, scratch_operands = 0 : i64, tpu.core_type = #tpu.core_type<tc>, window_params = [{transform_indices = @transform_0, window_bounds = array<i64: 128, 256>}, {pipeline_mode = #tpu.pipeline_mode<synchronous>, transform_indices = @transform_1, window_bounds = array<i64: 256, 128>}, {pipeline_mode = #tpu.pipeline_mode<synchronous>, transform_indices = @transform_2, window_bounds = array<i64: 128, 128>}, {pipeline_mode = #tpu.pipeline_mode<synchronous>, transform_indices = @transform_3, window_bounds = array<i64: 1, 128>}, {pipeline_mode = #tpu.pipeline_mode<synchronous>, transform_indices = @transform_4, window_bounds = array<i64: 128, 128>}, {pipeline_mode = #tpu.pipeline_mode<synchronous>, transform_indices = @transform_5, window_bounds = array<i64: 1, 128>}, {transform_indices = @transform_6, window_bounds = array<i64: 128, 128>}]} {
    %c0 = arith.constant 0 : index
    %c0_0 = arith.constant 0 : index
    %0 = vector.load %arg1[%c0, %c0_0] : memref<128x256xi8, #tpu.memory_space<vmem>>, vector<128x256xi8>
    %1 = arith.sitofp %0 : vector<128x256xi8> to vector<128x256xbf16>
    %c0_1 = arith.constant 0 : index
    %c0_2 = arith.constant 0 : index
    %2 = vector.load %arg2[%c0_1, %c0_2] : memref<256x128xbf16, #tpu.memory_space<vmem>>, vector<256x128xbf16>
    %cst = arith.constant dense<0.000000e+00> : vector<128x128xf32>
    %3 = tpu.matmul %1, %2, %cst {dimension_numbers = #tpu.dot_dimension_numbers<[1], [0], [0], [1], [0, 0, 1, 1], [], []>} : vector<128x256xbf16>, vector<256x128xbf16>, vector<128x128xf32> -> vector<128x128xf32>
    %c128_i32 = arith.constant 128 : i32
    %4 = arith.muli %arg0, %c128_i32 : i32
    %5 = tpu.assume_multiple %4, 128 : i32
    %6 = arith.index_cast %5 : i32 to index
    %c0_3 = arith.constant 0 : index
    %7 = vector.load %arg2[%6, %c0_3] : memref<256x128xbf16, #tpu.memory_space<vmem>>, vector<128x128xbf16>
    %8 = arith.extf %7 : vector<128x128xbf16> to vector<128x128xf32>
    %cst_4 = arith.constant 1.000000e+00 : f32
    %9 = vector.broadcast %cst_4 : f32 to vector<128x128xf32>
    %10 = arith.mulf %9, %8 : vector<128x128xf32>
    %11 = arith.addf %3, %10 : vector<128x128xf32>
    %12 = arith.truncf %11 : vector<128x128xf32> to vector<128x128xbf16>
    %c0_5 = arith.constant 0 : index
    %c0_6 = arith.constant 0 : index
    %13 = vector.load %arg3[%c0_5, %c0_6] : memref<128x128xbf16, #tpu.memory_space<vmem>>, vector<128x128xbf16>
    %cst_7 = arith.constant dense<0.000000e+00> : vector<128x128xf32>
    %14 = tpu.matmul %12, %13, %cst_7 {dimension_numbers = #tpu.dot_dimension_numbers<[1], [0], [0], [1], [0, 0, 1, 1], [], []>} : vector<128x128xbf16>, vector<128x128xbf16>, vector<128x128xf32> -> vector<128x128xf32>
    %c0_8 = arith.constant 0 : index
    %c0_9 = arith.constant 0 : index
    %15 = vector.load %arg4[%c0_8, %c0_9] : memref<1x128xf32, #tpu.memory_space<vmem>>, vector<1x128xf32>
    %16 = vector.broadcast %15 : vector<1x128xf32> to vector<128x128xf32>
    %17 = arith.addf %14, %16 : vector<128x128xf32>
    %cst_10 = arith.constant 0.000000e+00 : f32
    %18 = vector.broadcast %cst_10 : f32 to vector<128x128xf32>
    %19 = arith.maximumf %17, %18 : vector<128x128xf32>
    %20 = arith.truncf %19 : vector<128x128xf32> to vector<128x128xbf16>
    %c0_11 = arith.constant 0 : index
    %c0_12 = arith.constant 0 : index
    %21 = vector.load %arg5[%c0_11, %c0_12] : memref<128x128xbf16, #tpu.memory_space<vmem>>, vector<128x128xbf16>
    %cst_13 = arith.constant dense<0.000000e+00> : vector<128x128xf32>
    %22 = tpu.matmul %20, %21, %cst_13 {dimension_numbers = #tpu.dot_dimension_numbers<[1], [0], [0], [1], [0, 0, 1, 1], [], []>} : vector<128x128xbf16>, vector<128x128xbf16>, vector<128x128xf32> -> vector<128x128xf32>
    %c0_14 = arith.constant 0 : index
    %c0_15 = arith.constant 0 : index
    %23 = vector.load %arg6[%c0_14, %c0_15] : memref<1x128xf32, #tpu.memory_space<vmem>>, vector<1x128xf32>
    %24 = vector.broadcast %23 : vector<1x128xf32> to vector<128x128xf32>
    %25 = arith.addf %22, %24 : vector<128x128xf32>
    %cst_16 = arith.constant 0.000000e+00 : f32
    %26 = vector.broadcast %cst_16 : f32 to vector<128x128xf32>
    %27 = arith.maximumf %25, %26 : vector<128x128xf32>
    %28 = arith.truncf %27 : vector<128x128xf32> to vector<128x128xbf16>
    %c0_17 = arith.constant 0 : index
    %c0_18 = arith.constant 0 : index
    %29 = vector.load %arg7[%c0_17, %c0_18] : memref<128x128xbf16, #tpu.memory_space<vmem>>, vector<128x128xbf16>
    tpu.vector_store %arg7[%c0_17, %c0_18], %28 {strides = array<i32>} : memref<128x128xbf16, #tpu.memory_space<vmem>>, vector<128x128xbf16>,
    return
  }
  func.func @transform_0(%arg0: i32) -> (i32, i32) {
    %c0_i32 = arith.constant 0 : i32
    %c0_i32_0 = arith.constant 0 : i32
    return %arg0, %c0_i32 : i32, i32
  }
  func.func @transform_1(%arg0: i32) -> (i32, i32) {
    %c0_i32 = arith.constant 0 : i32
    %c0_i32_0 = arith.constant 0 : i32
    %c0_i32_1 = arith.constant 0 : i32
    return %c0_i32, %c0_i32_0 : i32, i32
  }
  func.func @transform_2(%arg0: i32) -> (i32, i32) {
    %c0_i32 = arith.constant 0 : i32
    %c0_i32_0 = arith.constant 0 : i32
    %c0_i32_1 = arith.constant 0 : i32
    return %c0_i32, %c0_i32_0 : i32, i32
  }
  func.func @transform_3(%arg0: i32) -> (i32, i32) {
    %c0_i32 = arith.constant 0 : i32
    %c0_i32_0 = arith.constant 0 : i32
    %c0_i32_1 = arith.constant 0 : i32
    return %c0_i32, %c0_i32_0 : i32, i32
  }
  func.func @transform_4(%arg0: i32) -> (i32, i32) {
    %c0_i32 = arith.constant 0 : i32
    %c0_i32_0 = arith.constant 0 : i32
    %c0_i32_1 = arith.constant 0 : i32
    return %c0_i32, %c0_i32_0 : i32, i32
  }
  func.func @transform_5(%arg0: i32) -> (i32, i32) {
    %c0_i32 = arith.constant 0 : i32
    %c0_i32_0 = arith.constant 0 : i32
    %c0_i32_1 = arith.constant 0 : i32
    return %c0_i32, %c0_i32_0 : i32, i32
  }
  func.func @transform_6(%arg0: i32) -> (i32, i32) {
    %c0_i32 = arith.constant 0 : i32
    %c0_i32_0 = arith.constant 0 : i32
    return %arg0, %c0_i32 : i32, i32
  }
}

</mosaic_0001>

<bundles_post_ra>
// kernel: tpu_custom_call.1
= control target key start
LH: loop header
LB: loop body
LE: loop exit
PB: predicated region body
PF: predicated region fallthrough
CT: control target
= control target key end

     0   :  { %11 = vsyncpa [#allocation3], 0  ;;  %s2185_s0 = inlined_call_operand.hbm [shape: s8[256,256], index: 0, kind: input, shape index: {}]   ;;  %s2186_s1 = inlined_call_operand.hbm [shape: bf16[256,128], index: 1, kind: input, shape index: {}]   ;;  %s2187_s2 = inlined_call_operand.hbm [shape: bf16[128,128], index: 2, kind: input, shape index: {}]   ;;  %s2188_s3 = inlined_call_operand.vmem [shape: f32[1,128], index: 3, kind: input, shape index: {}]   ;;  %s2189_s4 = inlined_call_operand.hbm [shape: bf16[128,128], index: 4, kind: input, shape index: {}]   ;;  %s2190_s5 = inlined_call_operand.vmem [shape: f32[1,128], index: 5, kind: input, shape index: {}]   ;;  %s2191_s6 = inlined_call_operand.hbm [shape: bf16[256,128], index: 6, kind: output, shape index: {}]  }
   0x1   :  { %13 = vsyncpa [#allocation3 + $0x1], 0 }
   0x2   :  { %14 = vsyncpa [#allocation6], 0 }
   0x3   :  { %15 = vsyncpa [#allocation9], 0 }
   0x4   :  { %16 = vsyncpa [#allocation4], 0 }
   0x5   :  { %18 = vsyncpa [#allocation4 + $0x1], 0  ;;  %s1875_s21 = smov 0   ;;  %s1877_s22 = smov 0  }
   0x6   :  { %s1879_s23 = smov 0   ;;  %s1881_s24 = smov 0  }
   0x7 LB: > { %s1896_s25 = sadd.s32 4294967295, %s1827_s24   ;;  %s1186_s26 = sadd.s32 4294967294, %s1827_s24   ;;  %s1827_s24 = sphi %s1881_s24, %s2214_s24   ;;  %s1823_s23 = sphi %s1879_s23, %s2213_s23   ;;  %s1819_s22 = sphi %s1877_s22, %s2212_s22   ;;  %s1815_s21 = sphi %s1875_s21, %s2211_s21  }
   0x8   : > { %p44_p0 = scmp.ne.s32.totalorder %s1819_s22, %s1815_s21  ;;  %p2192_p1 = scmp.eq.s32.totalorder %s1896_s25, 0 }
   0x9   : > { %p179_p3 = scmp.eq.s32.totalorder %s1186_s26, 1  ;;  %p1187_p5 = scmp.ge.s32.totalorder %s1827_s24, 1 }
   0xa   : > { %p1905_p4 = por %p2192_p1, %p44_p0  ;;  %p186_p7 = scmp.lt.s32.totalorder %s1827_s24, 3 }
   0xb   : > { %p1910_p6 = por %p179_p3, %p44_p0  ;;  %s1829_s30 = smov [#allocation5]  }
   0xc   : > { %s2195_s27 = scalar_select %p1905_p4, 1, 0 }
   0xd   : > { %s2196_s28 = scalar_select %p1910_p6, 1, 0 }
   0xe   : > { %p1915_p8 = pnand %p1187_p5, %p186_p7  ;;  %s198_s7 = sshll.u32 %s1829_s30, 4  ;;  %s1919_s7 = int_to_ptr.vmem [resolvable:$true] %s198_s7 }
   0xf   : > { %s1830_s9 = smov [#allocation7]   ;;  %s1831_s11 = smov [#allocation8]  }
  0x10   : > { %s2197_s29 = scalar_select %p1915_p8, 1, 0 }
  0x11   : > { %p1540_p9 = pneg %p1915_p8  ;;  %s211_s10 = sshll.u32 %s1830_s9, 4  ;;  %s1930_s10 = int_to_ptr.vmem [resolvable:$true] %s211_s10 }
  0x12   : > { %s1932_s12 = sshll.u32 %s1831_s11, 4  ;;  %s1639_s15 = scalar_lea.hbm %s2186_s1, 2048  ;;  %s228_s12 = int_to_ptr.vmem [resolvable:$true] %s1932_s12 }
  0x13   : > { %p1926_p11 = pnand %p1540_p9, %p2192_p1  ;;  %p1640_p12 = scmp.ne.s32.totalorder %s2186_s1, %s1639_s15 }
  0x14   : > { %p1646_p5 = scmp.lt.u32.totalorder %s1639_s15, %s2186_s1 }
  0x15   : > { %p1942_p13 = pneg %p1926_p11 }
  0x17   : > { %p1642_p0 = pnand %p1942_p13, %p1640_p12 }
  0x19   : > { %p1643_p3 = pneg %p1642_p0 }
  0x1b   : > { %p1648_p7 = pnand %p1646_p5, %p1643_p3 }
  0x1d   : > { %1651 = shalt.err (!%p1648_p7)
}
  0x1e   : > { %s1652_s26 = scalar_lea.vmem %s1919_s7, 2048  ;;  %p1660_p2 = scmp.lt.s32.totalorder %s1919_s7, %s1919_s7 }
  0x1f   : > { %p1653_p9 = scmp.ne.s32.totalorder %s1919_s7, %s1652_s26  ;;  %p1661_p6 = scmp.lt.s32.totalorder %s1652_s26, %s1652_s26 }
  0x21   : > { %p1655_p10 = pnand %p1653_p9, %p1942_p13  ;;  %p1662_p12 = por %p1661_p6, %p1660_p2 }
  0x23   : > { %p1656_p1 = pneg %p1655_p10 }
  0x25   : > { %p1663_p0 = pnand %p1662_p12, %p1656_p1 }
  0x27   : > { %1666 = shalt.err (!%p1663_p0)
}
  0x28   : > { %s1832_s30 = smov 64   ;;  %s1833_s9 = smov 4  }
  0x29   : > { %1543 = dma.hbm_to_vmem [thread:$0]  (!%p1926_p11), %s2186_s1, 2048, %s1919_s7, [#allocation6], %s1832_s30, %s1832_s30, %s1833_s9  }
  0x2a   : > { %s1667_s16 = scalar_lea.hbm %s2187_s2, 1024 }
  0x2b   : > { %p1668_p1 = scmp.ne.s32.totalorder %s2187_s2, %s1667_s16  ;;  %p1674_p10 = scmp.lt.u32.totalorder %s1667_s16, %s2187_s2 }
  0x2d   : > { %p1670_p2 = pnand %p1668_p1, %p1942_p13 }
  0x2f   : > { %p1671_p6 = pneg %p1670_p2 }
  0x31   : > { %p1676_p3 = pnand %p1674_p10, %p1671_p6 }
  0x33   : > { %1679 = shalt.err (!%p1676_p3)
}
  0x34   : > { %s1680_s7 = scalar_lea.vmem %s1930_s10, 1024  ;;  %p1688_p12 = scmp.lt.s32.totalorder %s1930_s10, %s1930_s10 }
  0x35   : > { %p1681_p5 = scmp.ne.s32.totalorder %s1930_s10, %s1680_s7  ;;  %p1689_p0 = scmp.lt.s32.totalorder %s1680_s7, %s1680_s7 }
  0x37   : > { %p1683_p7 = pnand %p1681_p5, %p1942_p13  ;;  %p1690_p1 = por %p1689_p0, %p1688_p12 }
  0x39   : > { %p1684_p9 = pneg %p1683_p7 }
  0x3b   : > { %p1691_p2 = pnand %p1690_p1, %p1684_p9 }
  0x3d   : > { %1694 = shalt.err (!%p1691_p2)
}
  0x3e   : > { %1546 = dma.hbm_to_vmem [thread:$0]  (!%p1926_p11), %s2187_s2, 1024, %s1930_s10, [#allocation6], %s1832_s30, %s1832_s30, %s1833_s9  }
  0x3f   : > { %s1695_s16 = scalar_lea.hbm %s2189_s4, 1024 }
  0x40   : > { %p1696_p6 = scmp.ne.s32.totalorder %s2189_s4, %s1695_s16  ;;  %p1702_p5 = scmp.lt.u32.totalorder %s1695_s16, %s2189_s4 }
  0x42   : > { %p1698_p10 = pnand %p1696_p6, %p1942_p13 }
  0x44   : > { %p1699_p3 = pneg %p1698_p10 }
  0x46   : > { %p1704_p7 = pnand %p1702_p5, %p1699_p3 }
  0x48   : > { %1707 = shalt.err (!%p1704_p7)
}
  0x49   : > { %s1708_s7 = scalar_lea.vmem %s228_s12, 1024  ;;  %p1716_p1 = scmp.lt.s32.totalorder %s228_s12, %s228_s12 }
  0x4a   : > { %p1709_p9 = scmp.ne.s32.totalorder %s228_s12, %s1708_s7  ;;  %p1717_p2 = scmp.lt.s32.totalorder %s1708_s7, %s1708_s7 }
  0x4c   : > { %p1711_p12 = pnand %p1709_p9, %p1942_p13  ;;  %p1718_p4 = por %p1717_p2, %p1716_p1 }
  0x4e   : > { %p1712_p0 = pneg %p1711_p12 }
  0x50   : > { %p1719_p8 = pnand %p1718_p4, %p1712_p0 }
  0x52   : > { %1722 = shalt.err (!%p1719_p8)
}
  0x53   : > { %1549 = dma.hbm_to_vmem [thread:$0]  (!%p1926_p11), %s2189_s4, 1024, %s228_s12, [#allocation9], %s1832_s30, %s1832_s30, %s1833_s9  }
  0x54   : > { %s2015_s18 = sadd.s32 1, %s1827_s24   ;;  %s31_s13 = sadd.s32 1, %s1823_s23 }
  0x55   : > { %s28_s8 = ssub.s32 %s1827_s24, %s2015_s18  ;;  %p38_p8 = scmp.ne.s32.totalorder %s1823_s23, %s1819_s22 }
  0x56   : > { %p29_p4 = scmp.eq.s32.totalorder %s28_s8, 0  ;;  %p39_p13 = scmp.eq.s32.totalorder %s1827_s24, 0 }
  0x57   : > { %p1561_p6 = scmp.lt.s32.totalorder %s1827_s24, 2  ;;  %p2200_p3 = scmp.eq.s32.totalorder %s1896_s25, 1 }
  0x58   : > { %s2025_s14 = scalar_select %p29_p4, %s1823_s23, %s31_s13  }
  0x59   : > { %p40_p10 = por %p39_p13, %p38_p8  ;;  %p2029_p5 = por %p2200_p3, %p38_p8 }
  0x5a   : > { %s244_s16 = sand.u32 1, %s1823_s23   ;;  %s1260_s17 = sshll.u32 %s1827_s24, 10 }
  0x5b   : > { %s1192_s12 = sshll.u32 %s244_s16, 6  ;;  %s2038_s19 = scalar_lea.hbm %s2185_s0, %s1260_s17 }
  0x5c   : > { %s248_s20 = scalar_lea.vmem [#allocation2], %s1192_s12  ;;  %p2040_p11 = pnand %p1561_p6, %p40_p10 }
  0x5d   : > { %s256_s26 = sshll.u32 %s248_s20, 4  ;;  %s2046_s10 = scalar_lea.sflag [#allocation3], %s244_s16  ;;  %s2044_s26 = int_to_ptr.vmem [resolvable:$true] %s256_s26 }
  0x5e   : > { %s1723_s11 = scalar_lea.hbm %s2038_s19, 1024  ;;  %p1725_p9 = pneg %p2040_p11 }
  0x5f   : > { %p1724_p7 = scmp.ne.s32.totalorder %s2038_s19, %s1723_s11  ;;  %s1728_s17 = scalar_lea.hbm %s2185_s0, 2048 }
  0x60   : > { %p1729_p1 = scmp.lt.u32.totalorder %s2038_s19, %s2185_s0  ;;  %p1730_p2 = scmp.lt.u32.totalorder %s1728_s17, %s1723_s11 }
  0x61   : > { %p1726_p12 = pnand %p1725_p9, %p1724_p7  ;;  %p1732_p8 = scmp.lt.u32.totalorder %s1723_s11, %s2038_s19 }
  0x62   : > { %p1731_p4 = por %p1730_p2, %p1729_p1 }
  0x63   : > { %p1727_p0 = pneg %p1726_p12 }
  0x64   : > { %p1733_p13 = por %p1732_p8, %p1731_p4 }
  0x66   : > { %p1734_p6 = pnand %p1733_p13, %p1727_p0 }
  0x68   : > { %1737 = shalt.err (!%p1734_p6)
}
  0x69   : > { %s1738_s16 = scalar_lea.vmem %s2044_s26, 1024  ;;  %s1834_s9 = smov [#allocation2]  }
  0x6a   : > { %p1739_p10 = scmp.ne.s32.totalorder %s2044_s26, %s1738_s16  ;;  %s1743_s20 = sshll.u32 %s1834_s9, 4  ;;  %s1744_s20 = int_to_ptr.vmem [resolvable:$false] %s1743_s20 }
  0x6b   : > { %s1745_s8 = scalar_lea.vmem %s1744_s20, 2048  ;;  %p1746_p12 = scmp.lt.s32.totalorder %s2044_s26, %s1744_s20 }
  0x6c   : > { %p1741_p3 = pnand %p1739_p10, %p1725_p9  ;;  %p1747_p1 = scmp.lt.s32.totalorder %s1745_s8, %s1738_s16 }
  0x6e   : > { %p1742_p7 = pneg %p1741_p3  ;;  %p1748_p2 = por %p1747_p1, %p1746_p12 }
  0x70   : > { %p1749_p4 = pnand %p1748_p2, %p1742_p7 }
  0x72   : > { %1752 = shalt.err (!%p1749_p4)
}
  0x73   : > { %s1835_s11 = smov 256   ;;  %s1836_s13 = smov 16  }
  0x74   : > { %1553 = dma.hbm_to_vmem [thread:$0]  (!%p2040_p11), %s2038_s19, 1024, %s2044_s26, %s2046_s10, %s1835_s11, %s1835_s11, %s1836_s13  }
  0x75   : > { %p2203_p9 = scmp.ne.s32.totalorder %s2197_s29, 0 }
  0x76   : > { %s2077_s17 = sand.u32 (!%p2203_p9), 1, %s1819_s22   ;;  %p2204_p0 = scmp.ne.s32.totalorder (!%p2203_p9), %s2195_s27, 0 }
  0x77   : > { %268 = sbr.rel (%p2203_p9) target bundleno = 902 (0x386), region = 44  ;;  %s1197_s12 = sshll.u32 (!%p2203_p9), %s2077_s17, 6 }
  0x78   : > { %s271_s30 = scalar_lea.sflag (!%p2203_p9), [#allocation3], %s2077_s17  ;;  %s2083_s16 = scalar_lea.vmem (!%p2203_p9), [#allocation2], %s1197_s12 }
  0x7e   : > { %1798 = dma.done.wait (%p2204_p0), %s271_s30, 1024  }
  0x7f   : > { %1800 = vsyncadd (%p2204_p0), %s271_s30, 4294966272  ;;  %p2205_p11 = scmp.eq.s32.totalorder %s1896_s25, 0 }
  0x81   : > { %1802 = dma.done.wait (%p2205_p11), [#allocation6], 3072   ;;  %p2206_p8 = pmov %p2205_p11 }
  0x83   : > { %1804 = vsyncadd (%p2206_p8), [#allocation6], 4294964224  ;;  %p2207_p13 = pmov %p2206_p8 }
  0x84   : > { %p2208_p6 = pmov %p2206_p8 }
  0x85   : > { %1806 = dma.done.wait (%p2207_p13), [#allocation9], 1024  }
  0x86   : > { %1808 = vsyncadd (%p2208_p6), [#allocation9], 4294966272  ;;  %v1607_v0 = vld [vmem:[#allocation5 + $0x40] sm:$0xff]   ;;  %v1609_v2 = vld [vmem:[#allocation5 + $0x48] sm:$0xff]   ;;  %s1202_s27 = sshll.u32 %s1896_s25, 7  ;;  %s2124_s8 = scalar_lea.vmem [#allocation10], %s1197_s12 }
  0x87   : > { %v1608_v1 = vld [vmem:[#allocation5] sm:$0xff]   ;;  %1364 = vmatprep.subr.bf16.mxu0 %v1607_v0  ;;  %v1610_v3 = vld [vmem:[#allocation5 + $0x8] sm:$0xff]   ;;  %v1611_v4 = vld [vmem:[#allocation5 + $0x50] sm:$0xff]   ;;  %s375_s29 = sshra.s32 %s1202_s27, 3  ;;  %s1082_s11 = sshll.u32 %s2124_s8, 4  ;;  %s2134_s11 = int_to_ptr.vmem [resolvable:$true] %s1082_s11 }
  0x88   : > { %1365 = vmatpush3.bf16.msra.mxu0 %v1608_v1  ;;  %v1612_v5 = vld [vmem:[#allocation5 + $0x10] sm:$0xff]   ;;  %v1613_v6 = vld [vmem:[#allocation5 + $0x58] sm:$0xff]   ;;  %v1615_v8 = vld [vmem:[#allocation5 + $0x60] sm:$0xff]   ;;  %s1203_s19 = sshll.u32 %s375_s29, 2  ;;  %s1277_s13 = sshll.u32 %s1896_s25, 10 }
  0x89   : > { %1366 = vmatprep.subr.bf16.mxu0 %v1609_v2  ;;  %v1614_v7 = vld [vmem:[#allocation5 + $0x18] sm:$0xff]   ;;  %v1616_v9 = vld [vmem:[#allocation5 + $0x20] sm:$0xff]   ;;  %v1617_v10 = vld [vmem:[#allocation5 + $0x68] sm:$0xff]   ;;  %s2106_s26 = scalar_lea.vmem [#allocation5], %s1203_s19  ;;  %s1069_s27 = scalar_lea.sflag [#allocation4], %s2077_s17 }
  0x8a   : > { %v319_v11 = vld [vmem:[%s2083_s16 + $0x8] sm:$0xff]  ;;  %v1619_v14 = vld [vmem:[#allocation5 + $0x70] sm:$0xff]   ;;  %v1623_v15 = vld [vmem:[#allocation7] sm:$0xff]   ;;  %s1753_s25 = scalar_lea.vmem %s2134_s11, 1024  ;;  %s1837_s29 = smov [#allocation10]  }
  0x8b   : > { %v327_v12 = vunpack.c.l.s8.bf16 %v319_v11  ;;  %v1618_v13 = vld [vmem:[#allocation5 + $0x28] sm:$0xff]   ;;  %v1620_v17 = vld [vmem:[#allocation5 + $0x30] sm:$0xff]   ;;  %1460 = vmatprep.subr.bf16.mxu1 %v1623_v15  ;;  %v1621_v18 = vld [vmem:[#allocation5 + $0x78] sm:$0xff]   ;;  %v329_v24 = vunpack.c.h.s8.bf16 %v319_v11  ;;  %p1754_p10 = scmp.ne.s32.totalorder %s2134_s11, %s1753_s25  ;;  %s1757_s19 = sshll.u32 %s1837_s29, 4  ;;  %s1758_s19 = int_to_ptr.vmem [resolvable:$false] %s1757_s19 }
  0x8c   : > { %1367 = vmatpush3.bf16.msra.mxu0 %v1610_v3  ;;  %v1624_v16 = vld [vmem:[#allocation7 + $0x8] sm:$0xff]   ;;  %1461 = vmatpush3.bf16.msra.mxu1 %v1623_v15  ;;  %v1625_v19 = vld [vmem:[#allocation7 + $0x10] sm:$0xff]   ;;  %v1622_v20 = vld [vmem:[#allocation5 + $0x38] sm:$0xff]   ;;  %p1760_p12 = scmp.lt.s32.totalorder %s2134_s11, %s1758_s19 }
  0x8d   : > { %1368 = vmatprep.subr.bf16.mxu0 %v1611_v4  ;;  %539 = vmatprep.mubr.bf16.mxu0 %v327_v12  ;;  %v318_v21 = vld [vmem:[%s2083_s16] sm:$0xff]  ;;  %v1626_v22 = vld [vmem:[#allocation7 + $0x18] sm:$0xff]   ;;  %v320_v28 = vld [vmem:[%s2083_s16 + $0x10] sm:$0xff]  ;;  %p1755_p3 = pnand %p1754_p10, %p2029_p5 }
  0x8e   : > { %1462 = vmatprep.subr.bf16.mxu1 %v1624_v16  ;;  %v326_v23 = vunpack.c.l.s8.bf16 %v318_v21  ;;  %v321_v25 = vld [vmem:[%s2083_s16 + $0x18] sm:$0xff]  ;;  %v328_v26 = vunpack.c.h.s8.bf16 %v318_v21  ;;  %v330_v29 = vunpack.c.l.s8.bf16 %v320_v28  ;;  %v323_v31 = vld [vmem:[%s2083_s16 + $0x28] sm:$0xff]  ;;  %v332_v32 = vunpack.c.h.s8.bf16 %v320_v28  ;;  %v322_v34 = vld [vmem:[%s2083_s16 + $0x20] sm:$0xff] }
  0x8f   : > { %v331_v27 = vunpack.c.l.s8.bf16 %v321_v25  ;;  %v333_v30 = vunpack.c.h.s8.bf16 %v321_v25  ;;  %v335_v33 = vunpack.c.l.s8.bf16 %v323_v31  ;;  %v334_v35 = vunpack.c.l.s8.bf16 %v322_v34  ;;  %v325_v37 = vld [vmem:[%s2083_s16 + $0x38] sm:$0xff]  ;;  %v324_v40 = vld [vmem:[%s2083_s16 + $0x30] sm:$0xff]  ;;  %v1627_v44 = vld [vmem:[#allocation7 + $0x20] sm:$0xff]   ;;  %s2139_s16 = scalar_lea.hbm %s2191_s6, %s1277_s13  ;;  %p1756_p7 = pneg %p1755_p3 }
  0x90   : > { %1369 = vmatpush3.bf16.msra.mxu0 %v1612_v5  ;;  %1463 = vmatpush3.bf16.msra.mxu1 %v1624_v16  ;;  %v337_v36 = vunpack.c.h.s8.bf16 %v323_v31  ;;  %v336_v38 = vunpack.c.h.s8.bf16 %v322_v34  ;;  %v339_v39 = vunpack.c.l.s8.bf16 %v325_v37  ;;  %v338_v41 = vunpack.c.l.s8.bf16 %v324_v40  ;;  %v1628_v45 = vld [vmem:[#allocation7 + $0x28] sm:$0xff]   ;;  %v1629_v46 = vld [vmem:[#allocation7 + $0x30] sm:$0xff]   ;;  %v1630_v47 = vld [vmem:[#allocation7 + $0x38] sm:$0xff]  }
  0x91   : > { %1370 = vmatprep.subr.bf16.mxu0 %v1613_v6  ;;  %1464 = vmatprep.subr.bf16.mxu1 %v1625_v19  ;;  %v341_v42 = vunpack.c.h.s8.bf16 %v325_v37  ;;  %v340_v43 = vunpack.c.h.s8.bf16 %v324_v40  ;;  %v1631_v48 = vld [vmem:[#allocation8] sm:$0xff]   ;;  %v1350_v60 = vld [vmem:[%s2106_s26 + $0x8] sm:$0xff]   ;;  %v1634_v25 = vld [vmem:[#allocation8 + $0x18] sm:$0xff]  }
  0x92   : > { %v1279_v49 = vld [vmem:[%s2106_s26] sm:$0xff]   ;;  %v1284_v0 = vunpack.c.l.bf16 %v1350_v60  ;;  %v1285_v3 = vunpack.c.h.bf16 %v1350_v60  ;;  %v1632_v11 = vld [vmem:[#allocation8 + $0x8] sm:$0xff]  }
  0x93   : > { %v1280_v54 = vunpack.c.l.bf16 %v1279_v49  ;;  %v1281_v55 = vunpack.c.h.bf16 %v1279_v49  ;;  %v1354_v49 = vld [vmem:[%s2106_s26 + $0x28] sm:$0xff]  }
  0x94   : > { %1371 = vmatpush3.bf16.msra.mxu0 %v1614_v7  ;;  %1465 = vmatpush3.bf16.msra.mxu1 %v1625_v19  ;;  %v1633_v19 = vld [vmem:[#allocation8 + $0x10] sm:$0xff]  }
  0x95   : > { %1372 = vmatprep.subr.bf16.mxu0 %v1615_v8  ;;  %1466 = vmatprep.subr.bf16.mxu1 %v1626_v22  ;;  %v1351_v8 = vld [vmem:[%s2106_s26 + $0x10] sm:$0xff]  }
  0x96   : > { %v1289_v16 = vunpack.c.h.bf16 %v1351_v8 }
  0x98   : > { %1373 = vmatpush3.bf16.msra.mxu0 %v1616_v9  ;;  %1467 = vmatpush3.bf16.msra.mxu1 %v1626_v22  ;;  %v1352_v22 = vld [vmem:[%s2106_s26 + $0x18] sm:$0xff]  }
  0x99   : > { %1374 = vmatprep.subr.bf16.mxu0 %v1617_v10  ;;  %1468 = vmatprep.subr.bf16.mxu1 %v1627_v44 }
  0x9c   : > { %1375 = vmatpush3.bf16.msra.mxu0 %v1618_v13  ;;  %1469 = vmatpush3.bf16.msra.mxu1 %v1627_v44  ;;  %v1288_v13 = vunpack.c.l.bf16 %v1351_v8 }
  0x9d   : > { %1376 = vmatprep.subr.bf16.mxu0 %v1619_v14  ;;  %1470 = vmatprep.subr.bf16.mxu1 %v1628_v45 }
  0xa0   : > { %1377 = vmatpush3.bf16.msra.mxu0 %v1620_v17  ;;  %1471 = vmatpush3.bf16.msra.mxu1 %v1628_v45 }
  0xa1   : > { %1378 = vmatprep.subr.bf16.mxu0 %v1621_v18  ;;  %1472 = vmatprep.subr.bf16.mxu1 %v1629_v46 }
  0xa4   : > { %1379 = vmatpush3.bf16.msra.mxu0 %v1622_v20  ;;  %1473 = vmatpush3.bf16.msra.mxu1 %v1629_v46 }
  0xa5   : > { %1474 = vmatprep.subr.bf16.mxu1 %v1630_v47 }
  0xa7   : > { %540 = vmatmul.mubr.bf16.vlgmr.msra.gmra.mrb[0].mxu0 %v326_v23 }
  0xa8   : > { %547 = vmatprep.mubr.bf16.mxu0 %v329_v24  ;;  %1475 = vmatpush3.bf16.msra.mxu1 %v1630_v47 }
  0xa9   : > { %1492 = vmatprep.subr.bf16.mxu1 %v1631_v48 }
  0xaf   : > { %548 = vmatmul.mubr.bf16.gmra.mrb[4].mxu0 %v328_v26 }
  0xb0   : > { %555 = vmatprep.mubr.bf16.mxu0 %v331_v27  ;;  %v1292_v27 = vunpack.c.l.bf16 %v1352_v22 }
  0xb7   : > { %556 = vmatmul.mubr.bf16.gmra.mrb[8].mxu0 %v330_v29 }
  0xb8   : > { %563 = vmatprep.mubr.bf16.mxu0 %v333_v30  ;;  %v1293_v30 = vunpack.c.h.bf16 %v1352_v22  ;;  %v1637_v22 = vld [vmem:[#allocation8 + $0x30] sm:$0xff]  }
  0xbf   : > { %564 = vmatmul.mubr.bf16.gmra.mrb[12].mxu0 %v332_v32 }
  0xc0   : > { %571 = vmatprep.mubr.bf16.mxu0 %v335_v33  ;;  %v1635_v33 = vld [vmem:[#allocation8 + $0x20] sm:$0xff]  }
  0xc7   : > { %572 = vmatmul.mubr.bf16.gmra.mrb[16].mxu0 %v334_v35 }
  0xc8   : > { %579 = vmatprep.mubr.bf16.mxu0 %v337_v36  ;;  %v1353_v36 = vld [vmem:[%s2106_s26 + $0x20] sm:$0xff]  }
  0xc9   : > { %v1297_v44 = vunpack.c.h.bf16 %v1353_v36 }
  0xcf   : > { %580 = vmatmul.mubr.bf16.gmra.mrb[20].mxu0 %v336_v38 }
  0xd0   : > { %587 = vmatprep.mubr.bf16.mxu0 %v339_v39  ;;  %v1636_v39 = vld [vmem:[#allocation8 + $0x28] sm:$0xff]  }
  0xd7   : > { %588 = vmatmul.mubr.bf16.gmra.mrb[24].mxu0 %v338_v41  ;;  %v1296_v41 = vunpack.c.l.bf16 %v1353_v36 }
  0xd8   : > { %595 = vmatprep.mubr.bf16.mxu0 %v341_v42 }
  0xdf   : > { %596 = vmatmul.mubr.bf16.gmra.mrb[28].mxu0 %v340_v43 }
 0x17a   : > { %v1380_v50 = vpop.f32.mrb[0].mxu0 }
 0x17b   : > { %v1381_v51 = vpop.f32.mrb[1].mxu0 }
 0x17c   : > { %v1382_v52 = vadd.f32 %v1381_v51, %v1380_v50  ;;  %v1383_v53 = vpop.f32.mrb[2].mxu0 }
 0x17d   : > { %v1384_v56 = vpop.f32.mrb[3].mxu0 }
 0x17e   : > { %v1385_v57 = vadd.f32 %v1384_v56, %v1383_v53  ;;  %v542_v58 = vadd.f32 %v1382_v52, %v1280_v54  ;;  %v1300_v53 = vunpack.c.l.bf16 %v1354_v49  ;;  %v1301_v56 = vunpack.c.h.bf16 %v1354_v49 }
 0x180   : > { %v545_v59 = vadd.f32 %v1385_v57, %v1281_v55 }
 0x182   : > { %v1386_v61 = vpop.f32.mrb[4].mxu0  ;;  %v604_v62 = vpack.c.bf16 %v545_v59, %v542_v58 }
 0x183   : > { %v1387_v63 = vpop.f32.mrb[5].mxu0 }
 0x184   : > { %v1388_v1 = vadd.f32 %v1387_v63, %v1386_v61  ;;  %v1389_v2 = vpop.f32.mrb[6].mxu0  ;;  %1476 = vmatprep.mubr.bf16.mxu1 %v604_v62  ;;  %v1355_v61 = vld [vmem:[%s2106_s26 + $0x30] sm:$0xff]  }
 0x185   : > { %v1390_v4 = vpop.f32.mrb[7].mxu0 }
 0x186   : > { %v1391_v5 = vadd.f32 %v1390_v4, %v1389_v2  ;;  %v550_v6 = vadd.f32 %v1388_v1, %v1284_v0  ;;  %v1304_v1 = vunpack.c.l.bf16 %v1355_v61  ;;  %v1305_v4 = vunpack.c.h.bf16 %v1355_v61 }
 0x188   : > { %v553_v7 = vadd.f32 %v1391_v5, %v1285_v3 }
 0x18a   : > { %v1392_v9 = vpop.f32.mrb[8].mxu0  ;;  %v605_v10 = vpack.c.bf16 %v553_v7, %v550_v6 }
 0x18b   : > { %v1393_v12 = vpop.f32.mrb[9].mxu0 }
 0x18c   : > { %v1394_v14 = vadd.f32 %v1393_v12, %v1392_v9  ;;  %v1395_v15 = vpop.f32.mrb[10].mxu0  ;;  %1477 = vmatmul.mubr.bf16.vlgmr.msra.gmra.mrb[0].mxu1 %v605_v10  ;;  %v1356_v9 = vld [vmem:[%s2106_s26 + $0x38] sm:$0xff]   ;;  %s1759_s26 = scalar_lea.vmem %s1758_s19, 2048 }
 0x18d   : > { %v1396_v17 = vpop.f32.mrb[11].mxu0  ;;  %1493 = vmatpush3.bf16.msra.mxu1 %v1631_v48  ;;  %p1761_p1 = scmp.lt.s32.totalorder %s1759_s26, %s1753_s25 }
 0x18e   : > { %v1397_v18 = vadd.f32 %v1396_v17, %v1395_v15  ;;  %1494 = vmatprep.subr.bf16.mxu1 %v1632_v11  ;;  %v558_v20 = vadd.f32 %v1394_v14, %v1288_v13  ;;  %v1308_v13 = vunpack.c.l.bf16 %v1356_v9 }
 0x18f   : > { %p1762_p2 = por %p1761_p1, %p1760_p12 }
 0x190   : > { %v561_v21 = vadd.f32 %v1397_v18, %v1289_v16  ;;  %v1309_v16 = vunpack.c.h.bf16 %v1356_v9 }
 0x191   : > { %1495 = vmatpush3.bf16.msra.mxu1 %v1632_v11  ;;  %p1763_p4 = pnand %p1762_p2, %p1756_p7 }
 0x192   : > { %v1398_v23 = vpop.f32.mrb[12].mxu0  ;;  %v606_v24 = vpack.c.bf16 %v561_v21, %v558_v20  ;;  %1496 = vmatprep.subr.bf16.mxu1 %v1633_v19 }
 0x193   : > { %v1399_v26 = vpop.f32.mrb[13].mxu0 }
 0x194   : > { %v1400_v28 = vadd.f32 %v1399_v26, %v1398_v23  ;;  %v1401_v29 = vpop.f32.mrb[14].mxu0  ;;  %1480 = vmatprep.mubr.bf16.mxu1 %v606_v24  ;;  %v1638_v23 = vld [vmem:[#allocation8 + $0x38] sm:$0xff]   ;;  %v1220_v24 = vld [vmem:[%s2188_s3] ss:$0 sm:$0xff] }
 0x195   : > { %v1402_v31 = vpop.f32.mrb[15].mxu0  ;;  %1497 = vmatpush3.bf16.msra.mxu1 %v1633_v19 }
 0x196   : > { %v1403_v32 = vadd.f32 %v1402_v31, %v1401_v29  ;;  %1498 = vmatprep.subr.bf16.mxu1 %v1634_v25  ;;  %v566_v34 = vadd.f32 %v1400_v28, %v1292_v27 }
 0x198   : > { %v569_v35 = vadd.f32 %v1403_v32, %v1293_v30 }
 0x199   : > { %1499 = vmatpush3.bf16.msra.mxu1 %v1634_v25 }
 0x19a   : > { %v1404_v37 = vpop.f32.mrb[16].mxu0  ;;  %v607_v38 = vpack.c.bf16 %v569_v35, %v566_v34  ;;  %1500 = vmatprep.subr.bf16.mxu1 %v1635_v33 }
 0x19b   : > { %v1405_v40 = vpop.f32.mrb[17].mxu0 }
 0x19c   : > { %v1406_v42 = vadd.f32 %v1405_v40, %v1404_v37  ;;  %v1407_v43 = vpop.f32.mrb[18].mxu0  ;;  %1481 = vmatmul.mubr.bf16.gmra.mrb[4].mxu1 %v607_v38 }
 0x19d   : > { %v1408_v45 = vpop.f32.mrb[19].mxu0  ;;  %1501 = vmatpush3.bf16.msra.mxu1 %v1635_v33 }
 0x19e   : > { %v1409_v46 = vadd.f32 %v1408_v45, %v1407_v43  ;;  %1502 = vmatprep.subr.bf16.mxu1 %v1636_v39  ;;  %v574_v47 = vadd.f32 %v1406_v42, %v1296_v41 }
 0x1a0   : > { %v577_v48 = vadd.f32 %v1409_v46, %v1297_v44 }
 0x1a1   : > { %1503 = vmatpush3.bf16.msra.mxu1 %v1636_v39 }
 0x1a2   : > { %v1410_v50 = vpop.f32.mrb[20].mxu0  ;;  %v608_v51 = vpack.c.bf16 %v577_v48, %v574_v47  ;;  %1504 = vmatprep.subr.bf16.mxu1 %v1637_v22 }
 0x1a3   : > { %v1411_v52 = vpop.f32.mrb[21].mxu0 }
 0x1a4   : > { %v1412_v54 = vadd.f32 %v1411_v52, %v1410_v50  ;;  %v1413_v55 = vpop.f32.mrb[22].mxu0  ;;  %1484 = vmatprep.mubr.bf16.mxu1 %v608_v51 }
 0x1a5   : > { %v1414_v57 = vpop.f32.mrb[23].mxu0  ;;  %1505 = vmatpush3.bf16.msra.mxu1 %v1637_v22 }
 0x1a6   : > { %v1415_v58 = vadd.f32 %v1414_v57, %v1413_v55  ;;  %v582_v59 = vadd.f32 %v1412_v54, %v1300_v53  ;;  %1506 = vmatprep.subr.bf16.mxu1 %v1638_v23 }
 0x1a8   : > { %v585_v60 = vadd.f32 %v1415_v58, %v1301_v56 }
 0x1a9   : > { %1507 = vmatpush3.bf16.msra.mxu1 %v1638_v23 }
 0x1aa   : > { %v1416_v62 = vpop.f32.mrb[24].mxu0  ;;  %v609_v63 = vpack.c.bf16 %v585_v60, %v582_v59 }
 0x1ab   : > { %v1417_v0 = vpop.f32.mrb[25].mxu0 }
 0x1ac   : > { %v1418_v2 = vadd.f32 %v1417_v0, %v1416_v62  ;;  %v1419_v3 = vpop.f32.mrb[26].mxu0  ;;  %1485 = vmatmul.mubr.bf16.gmra.mrb[8].mxu1 %v609_v63 }
 0x1ad   : > { %v1420_v5 = vpop.f32.mrb[27].mxu0 }
 0x1ae   : > { %v1421_v6 = vadd.f32 %v1420_v5, %v1419_v3  ;;  %v590_v7 = vadd.f32 %v1418_v2, %v1304_v1 }
 0x1b0   : > { %v593_v8 = vadd.f32 %v1421_v6, %v1305_v4 }
 0x1b2   : > { %v1422_v10 = vpop.f32.mrb[28].mxu0  ;;  %v610_v11 = vpack.c.bf16 %v593_v8, %v590_v7 }
 0x1b3   : > { %v1423_v12 = vpop.f32.mrb[29].mxu0 }
 0x1b4   : > { %v1424_v14 = vadd.f32 %v1423_v12, %v1422_v10  ;;  %v1425_v15 = vpop.f32.mrb[30].mxu0  ;;  %1488 = vmatprep.mubr.bf16.mxu1 %v610_v11 }
 0x1b5   : > { %v1426_v17 = vpop.f32.mrb[31].mxu0 }
 0x1b6   : > { %v1427_v18 = vadd.f32 %v1426_v17, %v1425_v15  ;;  %v598_v19 = vadd.f32 %v1424_v14, %v1308_v13  ;;  %v1229_v17 = vld [vmem:[%s2190_s5] ss:$0 sm:$0xff] }
 0x1b8   : > { %v601_v20 = vadd.f32 %v1427_v18, %v1309_v16 }
 0x1ba   : > { %v611_v21 = vpack.c.bf16 %v601_v20, %v598_v19 }
 0x1bc   : > { %1489 = vmatmul.mubr.bf16.gmra.mrb[12].mxu1 %v611_v21 }
 0x25f   : > { %v1478_v25 = vpop.f32.mrb[0].mxu1 }
 0x260   : > { %v726_v26 = vadd.f32 %v1478_v25, %v1220_v24  ;;  %v717_v27 = vpop.f32.mrb[1].mxu1 }
 0x261   : > { %v718_v28 = vadd.f32 %v1220_v24, %v717_v27  ;;  %v1479_v29 = vpop.f32.mrb[2].mxu1 }
 0x262   : > { %v729_v30 = vadd.f32 %v1479_v29, %v1220_v24  ;;  %v720_v31 = vpop.f32.mrb[3].mxu1  ;;  %v782_v33 = vmax.f32 %v726_v26, 0.0 }
 0x263   : > { %v721_v32 = vadd.f32 %v1220_v24, %v720_v31  ;;  %v780_v35 = vmax.f32 %v718_v28, 0.0 }
 0x264   : > { %v783_v34 = vmax.f32 %v729_v30, 0.0 }
 0x265   : > { %v781_v36 = vmax.f32 %v721_v32, 0.0 }
 0x266   : > { %v797_v37 = vpack.c.bf16 %v783_v34, %v782_v33 }
 0x267   : > { %v796_v38 = vpack.c.bf16 %v781_v36, %v780_v35 }
 0x269   : > { %1508 = vmatprep.mubr.bf16.mxu1 %v796_v38 }
 0x26a   : > { %1509 = vmatmul.mubr.bf16.vlgmr.msra.gmra.mrb[16].mxu1 %v797_v37 }
 0x26f   : > { %v1482_v39 = vpop.f32.mrb[4].mxu1 }
 0x270   : > { %v742_v40 = vadd.f32 %v1482_v39, %v1220_v24  ;;  %v733_v41 = vpop.f32.mrb[5].mxu1 }
 0x271   : > { %v734_v42 = vadd.f32 %v1220_v24, %v733_v41  ;;  %v1483_v43 = vpop.f32.mrb[6].mxu1 }
 0x272   : > { %v745_v44 = vadd.f32 %v1483_v43, %v1220_v24  ;;  %v736_v45 = vpop.f32.mrb[7].mxu1  ;;  %v786_v47 = vmax.f32 %v742_v40, 0.0 }
 0x273   : > { %v737_v46 = vadd.f32 %v1220_v24, %v736_v45  ;;  %v784_v49 = vmax.f32 %v734_v42, 0.0 }
 0x274   : > { %v787_v48 = vmax.f32 %v745_v44, 0.0 }
 0x275   : > { %v785_v50 = vmax.f32 %v737_v46, 0.0 }
 0x276   : > { %v799_v51 = vpack.c.bf16 %v787_v48, %v786_v47 }
 0x277   : > { %v798_v52 = vpack.c.bf16 %v785_v50, %v784_v49 }
 0x279   : > { %1512 = vmatprep.mubr.bf16.mxu1 %v798_v52 }
 0x27a   : > { %1513 = vmatmul.mubr.bf16.gmra.mrb[20].mxu1 %v799_v51 }
 0x27f   : > { %v1486_v53 = vpop.f32.mrb[8].mxu1 }
 0x280   : > { %v758_v54 = vadd.f32 %v1486_v53, %v1220_v24  ;;  %v749_v55 = vpop.f32.mrb[9].mxu1 }
 0x281   : > { %v750_v56 = vadd.f32 %v1220_v24, %v749_v55  ;;  %v1487_v57 = vpop.f32.mrb[10].mxu1 }
 0x282   : > { %v761_v58 = vadd.f32 %v1487_v57, %v1220_v24  ;;  %v752_v59 = vpop.f32.mrb[11].mxu1  ;;  %v790_v61 = vmax.f32 %v758_v54, 0.0 }
 0x283   : > { %v753_v60 = vadd.f32 %v1220_v24, %v752_v59  ;;  %v788_v63 = vmax.f32 %v750_v56, 0.0 }
 0x284   : > { %v791_v62 = vmax.f32 %v761_v58, 0.0 }
 0x285   : > { %v789_v0 = vmax.f32 %v753_v60, 0.0 }
 0x286   : > { %v801_v1 = vpack.c.bf16 %v791_v62, %v790_v61 }
 0x287   : > { %v800_v2 = vpack.c.bf16 %v789_v0, %v788_v63 }
 0x289   : > { %1516 = vmatprep.mubr.bf16.mxu1 %v800_v2 }
 0x28a   : > { %1517 = vmatmul.mubr.bf16.gmra.mrb[24].mxu1 %v801_v1 }
 0x28f   : > { %v1490_v3 = vpop.f32.mrb[12].mxu1 }
 0x290   : > { %v774_v4 = vadd.f32 %v1490_v3, %v1220_v24  ;;  %v765_v5 = vpop.f32.mrb[13].mxu1 }
 0x291   : > { %v766_v6 = vadd.f32 %v1220_v24, %v765_v5  ;;  %v1491_v7 = vpop.f32.mrb[14].mxu1 }
 0x292   : > { %v777_v8 = vadd.f32 %v1491_v7, %v1220_v24  ;;  %v768_v9 = vpop.f32.mrb[15].mxu1  ;;  %v794_v11 = vmax.f32 %v774_v4, 0.0 }
 0x293   : > { %v769_v10 = vadd.f32 %v1220_v24, %v768_v9  ;;  %v792_v13 = vmax.f32 %v766_v6, 0.0 }
 0x294   : > { %v795_v12 = vmax.f32 %v777_v8, 0.0 }
 0x295   : > { %v793_v14 = vmax.f32 %v769_v10, 0.0 }
 0x296   : > { %v803_v15 = vpack.c.bf16 %v795_v12, %v794_v11 }
 0x297   : > { %v802_v16 = vpack.c.bf16 %v793_v14, %v792_v13 }
 0x299   : > { %1520 = vmatprep.mubr.bf16.mxu1 %v802_v16 }
 0x29a   : > { %1521 = vmatmul.mubr.bf16.gmra.mrb[28].mxu1 %v803_v15 }
 0x33d   : > { %v1510_v18 = vpop.f32.mrb[16].mxu1 }
 0x33e   : > { %v918_v19 = vadd.f32 %v1510_v18, %v1229_v17  ;;  %v909_v20 = vpop.f32.mrb[17].mxu1 }
 0x33f   : > { %v910_v21 = vadd.f32 %v1229_v17, %v909_v20  ;;  %v1511_v22 = vpop.f32.mrb[18].mxu1 }
 0x340   : > { %v921_v23 = vadd.f32 %v1511_v22, %v1229_v17  ;;  %v912_v24 = vpop.f32.mrb[19].mxu1  ;;  %v974_v26 = vmax.f32 %v918_v19, 0.0 }
 0x341   : > { %v913_v25 = vadd.f32 %v1229_v17, %v912_v24  ;;  %v972_v28 = vmax.f32 %v910_v21, 0.0 }
 0x342   : > { %v975_v27 = vmax.f32 %v921_v23, 0.0 }
 0x343   : > { %v973_v29 = vmax.f32 %v913_v25, 0.0 }
 0x344   : > { %v1318_v30 = vpack.c.bf16 %v975_v27, %v974_v26 }
 0x345   : > { %v1313_v31 = vpack.c.bf16 %v973_v29, %v972_v28 }
 0x346   : > { %1357 = vst [vmem:[%s2124_s8 + $0x8] sm:$0xff] %v1318_v30  }
 0x347   : > { %1314 = vst [vmem:[%s2124_s8] sm:$0xff] %v1313_v31  }
 0x34d   : > { %v1514_v32 = vpop.f32.mrb[20].mxu1 }
 0x34e   : > { %v934_v33 = vadd.f32 %v1514_v32, %v1229_v17  ;;  %v925_v34 = vpop.f32.mrb[21].mxu1 }
 0x34f   : > { %v926_v35 = vadd.f32 %v1229_v17, %v925_v34  ;;  %v1515_v36 = vpop.f32.mrb[22].mxu1 }
 0x350   : > { %v937_v37 = vadd.f32 %v1515_v36, %v1229_v17  ;;  %v928_v38 = vpop.f32.mrb[23].mxu1  ;;  %v978_v40 = vmax.f32 %v934_v33, 0.0 }
 0x351   : > { %v929_v39 = vadd.f32 %v1229_v17, %v928_v38  ;;  %v976_v42 = vmax.f32 %v926_v35, 0.0 }
 0x352   : > { %v979_v41 = vmax.f32 %v937_v37, 0.0 }
 0x353   : > { %v977_v43 = vmax.f32 %v929_v39, 0.0 }
 0x354   : > { %v1328_v44 = vpack.c.bf16 %v979_v41, %v978_v40 }
 0x355   : > { %v1323_v45 = vpack.c.bf16 %v977_v43, %v976_v42 }
 0x356   : > { %1359 = vst [vmem:[%s2124_s8 + $0x18] sm:$0xff] %v1328_v44  }
 0x357   : > { %1358 = vst [vmem:[%s2124_s8 + $0x10] sm:$0xff] %v1323_v45  }
 0x35d   : > { %v1518_v46 = vpop.f32.mrb[24].mxu1 }
 0x35e   : > { %v950_v47 = vadd.f32 %v1518_v46, %v1229_v17  ;;  %v941_v48 = vpop.f32.mrb[25].mxu1 }
 0x35f   : > { %v942_v49 = vadd.f32 %v1229_v17, %v941_v48  ;;  %v1519_v50 = vpop.f32.mrb[26].mxu1 }
 0x360   : > { %v953_v51 = vadd.f32 %v1519_v50, %v1229_v17  ;;  %v944_v52 = vpop.f32.mrb[27].mxu1  ;;  %v982_v54 = vmax.f32 %v950_v47, 0.0 }
 0x361   : > { %v945_v53 = vadd.f32 %v1229_v17, %v944_v52  ;;  %v980_v56 = vmax.f32 %v942_v49, 0.0 }
 0x362   : > { %v983_v55 = vmax.f32 %v953_v51, 0.0 }
 0x363   : > { %v981_v57 = vmax.f32 %v945_v53, 0.0 }
 0x364   : > { %v1338_v58 = vpack.c.bf16 %v983_v55, %v982_v54 }
 0x365   : > { %v1333_v59 = vpack.c.bf16 %v981_v57, %v980_v56 }
 0x366   : > { %1361 = vst [vmem:[%s2124_s8 + $0x28] sm:$0xff] %v1338_v58  }
 0x367   : > { %1360 = vst [vmem:[%s2124_s8 + $0x20] sm:$0xff] %v1333_v59  }
 0x36d   : > { %v1522_v60 = vpop.f32.mrb[28].mxu1 }
 0x36e   : > { %v966_v61 = vadd.f32 %v1522_v60, %v1229_v17  ;;  %v957_v62 = vpop.f32.mrb[29].mxu1 }
 0x36f   : > { %v958_v63 = vadd.f32 %v1229_v17, %v957_v62  ;;  %v1523_v0 = vpop.f32.mrb[30].mxu1 }
 0x370   : > { %v969_v1 = vadd.f32 %v1523_v0, %v1229_v17  ;;  %v960_v2 = vpop.f32.mrb[31].mxu1  ;;  %v986_v4 = vmax.f32 %v966_v61, 0.0 }
 0x371   : > { %v961_v3 = vadd.f32 %v1229_v17, %v960_v2  ;;  %v984_v6 = vmax.f32 %v958_v63, 0.0 }
 0x372   : > { %v987_v5 = vmax.f32 %v969_v1, 0.0 }
 0x373   : > { %v985_v7 = vmax.f32 %v961_v3, 0.0 }
 0x374   : > { %v1348_v8 = vpack.c.bf16 %v987_v5, %v986_v4 }
 0x375   : > { %v1343_v9 = vpack.c.bf16 %v985_v7, %v984_v6 }
 0x376   : > { %1363 = vst [vmem:[%s2124_s8 + $0x38] sm:$0xff] %v1348_v8  }
 0x377   : > { %1362 = vst [vmem:[%s2124_s8 + $0x30] sm:$0xff] %v1343_v9  }
 0x378   : > { %1766 = shalt.err (!%p1763_p4)
}
 0x379   : > { %s1767_s7 = scalar_lea.hbm %s2139_s16, 1024  ;;  %s1771_s20 = scalar_lea.hbm %s2191_s6, 2048 }
 0x37a   : > { %p1768_p9 = scmp.ne.s32.totalorder %s2139_s16, %s1767_s7  ;;  %p1772_p8 = scmp.lt.u32.totalorder %s2139_s16, %s2191_s6 }
 0x37b   : > { %p1773_p13 = scmp.lt.u32.totalorder %s1771_s20, %s1767_s7  ;;  %p1775_p10 = scmp.lt.u32.totalorder %s1767_s7, %s2139_s16 }
 0x37c   : > { %p1769_p0 = pnand %p1768_p9, %p2029_p5 }
 0x37d   : > { %p1774_p6 = por %p1773_p13, %p1772_p8 }
 0x37e   : > { %p1770_p11 = pneg %p1769_p0 }
 0x37f   : > { %p1776_p3 = por %p1775_p10, %p1774_p6 }
 0x381   : > { %p1777_p7 = pnand %p1776_p3, %p1770_p11 }
 0x383   : > { %1780 = shalt.err (!%p1777_p7)
}
 0x384   : > { %s1838_s12 = smov 64   ;;  %s1839_s30 = smov 4  }
 0x385   : > { %1538 = dma.vmem_to_hbm [thread:$0]  (%p2029_p5), %s2134_s11, 1024, %s2139_s16, %s1069_s27, %s1838_s12, %s1838_s12, %s1839_s30  }
 0x386 PF: > { %s1097_s25 = sand.u32 1, %s1815_s21   ;;  %p2209_p12 = scmp.ne.s32.totalorder %s2196_s28, 0 }
 0x387   : > { %p2210_p1 = scmp.ge.s32.totalorder %s1827_s24, 2  ;;  %s1098_s29 = scalar_lea.sflag [#allocation4], %s1097_s25 }
 0x389   : > { %p1555_p2 = pnand %p2210_p1, %p2209_p12 }
 0x38b   : > { %1810 = dma.done.wait (!%p1555_p2), %s1098_s29, 1024  }
 0x38c   : > { %1812 = vsyncadd (!%p1555_p2), %s1098_s29, 4294966272  ;;  %p21_p4 = scmp.ge.s32.totalorder %s2015_s18, 4   ;;  %s2211_s21 = smov %s1819_s22 }
 0x38d   : > { %s2212_s22 = smov %s1823_s23  ;;  %s2213_s23 = smov %s2025_s14 }
 0x38e   : > { %s2214_s24 = smov %s2015_s18  ;;  %23 = sbr.rel (!%p21_p4) target bundleno = 7 (0x7), region = 102 }
 0x395   :  { %1103 = vsyncpa [#allocation3], 1 }
 0x396   :  { %1105 = vsyncpa [#allocation3 + $0x1], 1 }
 0x397   :  { %1106 = vsyncpa [#allocation6], 1 }
 0x398   :  { %1107 = vsyncpa [#allocation9], 1 }
 0x399   :  { %1108 = vsyncpa [#allocation4], 1 }
 0x39a   :  { %1110 = vsyncpa [#allocation4 + $0x1], 1 }

// kernel: tpu_custom_call.1
= control target key start
LH: loop header
LB: loop body
LE: loop exit
PB: predicated region body
PF: predicated region fallthrough
CT: control target
= control target key end

     0   :  { %11 = vsyncpa [#allocation3], 0  ;;  %s2185_s0 = inlined_call_operand.hbm [shape: s8[256,256], index: 0, kind: input, shape index: {}]   ;;  %s2186_s1 = inlined_call_operand.hbm [shape: bf16[256,128], index: 1, kind: input, shape index: {}]   ;;  %s2187_s2 = inlined_call_operand.hbm [shape: bf16[128,128], index: 2, kind: input, shape index: {}]   ;;  %s2188_s3 = inlined_call_operand.vmem [shape: f32[1,128], index: 3, kind: input, shape index: {}]   ;;  %s2189_s4 = inlined_call_operand.hbm [shape: bf16[128,128], index: 4, kind: input, shape index: {}]   ;;  %s2190_s5 = inlined_call_operand.vmem [shape: f32[1,128], index: 5, kind: input, shape index: {}]   ;;  %s2191_s6 = inlined_call_operand.hbm [shape: bf16[256,128], index: 6, kind: output, shape index: {}]  }
   0x1   :  { %13 = vsyncpa [#allocation3 + $0x1], 0 }
   0x2   :  { %14 = vsyncpa [#allocation6], 0 }
   0x3   :  { %15 = vsyncpa [#allocation9], 0 }
   0x4   :  { %16 = vsyncpa [#allocation4], 0 }
   0x5   :  { %18 = vsyncpa [#allocation4 + $0x1], 0  ;;  %s1875_s21 = smov 0   ;;  %s1877_s22 = smov 0  }
   0x6   :  { %s1879_s23 = smov 0   ;;  %s1881_s24 = smov 0  }
   0x7 LB: > { %s1896_s25 = sadd.s32 4294967295, %s1827_s24   ;;  %s1186_s26 = sadd.s32 4294967294, %s1827_s24   ;;  %s1827_s24 = sphi %s1881_s24, %s2214_s24   ;;  %s1823_s23 = sphi %s1879_s23, %s2213_s23   ;;  %s1819_s22 = sphi %s1877_s22, %s2212_s22   ;;  %s1815_s21 = sphi %s1875_s21, %s2211_s21  }
   0x8   : > { %p44_p0 = scmp.ne.s32.totalorder %s1819_s22, %s1815_s21  ;;  %p2192_p1 = scmp.eq.s32.totalorder %s1896_s25, 0 }
   0x9   : > { %p179_p3 = scmp.eq.s32.totalorder %s1186_s26, 1  ;;  %p1187_p5 = scmp.ge.s32.totalorder %s1827_s24, 1 }
   0xa   : > { %p1905_p4 = por %p2192_p1, %p44_p0  ;;  %p186_p7 = scmp.lt.s32.totalorder %s1827_s24, 3 }
   0xb   : > { %p1910_p6 = por %p179_p3, %p44_p0  ;;  %s1829_s30 = smov [#allocation5]  }
   0xc   : > { %s2195_s27 = scalar_select %p1905_p4, 1, 0 }
   0xd   : > { %s2196_s28 = scalar_select %p1910_p6, 1, 0 }
   0xe   : > { %p1915_p8 = pnand %p1187_p5, %p186_p7  ;;  %s198_s7 = sshll.u32 %s1829_s30, 4  ;;  %s1919_s7 = int_to_ptr.vmem [resolvable:$true] %s198_s7 }
   0xf   : > { %s1830_s9 = smov [#allocation7]   ;;  %s1831_s11 = smov [#allocation8]  }
  0x10   : > { %s2197_s29 = scalar_select %p1915_p8, 1, 0 }
  0x11   : > { %p1540_p9 = pneg %p1915_p8  ;;  %s211_s10 = sshll.u32 %s1830_s9, 4  ;;  %s1930_s10 = int_to_ptr.vmem [resolvable:$true] %s211_s10 }
  0x12   : > { %s1932_s12 = sshll.u32 %s1831_s11, 4  ;;  %s1639_s15 = scalar_lea.hbm %s2186_s1, 2048  ;;  %s228_s12 = int_to_ptr.vmem [resolvable:$true] %s1932_s12 }
  0x13   : > { %p1926_p11 = pnand %p1540_p9, %p2192_p1  ;;  %p1640_p12 = scmp.ne.s32.totalorder %s2186_s1, %s1639_s15 }
  0x14   : > { %p1646_p5 = scmp.lt.u32.totalorder %s1639_s15, %s2186_s1 }
  0x15   : > { %p1942_p13 = pneg %p1926_p11 }
  0x17   : > { %p1642_p0 = pnand %p1942_p13, %p1640_p12 }
  0x19   : > { %p1643_p3 = pneg %p1642_p0 }
  0x1b   : > { %p1648_p7 = pnand %p1646_p5, %p1643_p3 }
  0x1d   : > { %1651 = shalt.err (!%p1648_p7)
}
  0x1e   : > { %s1652_s26 = scalar_lea.vmem %s1919_s7, 2048  ;;  %p1660_p2 = scmp.lt.s32.totalorder %s1919_s7, %s1919_s7 }
  0x1f   : > { %p1653_p9 = scmp.ne.s32.totalorder %s1919_s7, %s1652_s26  ;;  %p1661_p6 = scmp.lt.s32.totalorder %s1652_s26, %s1652_s26 }
  0x21   : > { %p1655_p10 = pnand %p1653_p9, %p1942_p13  ;;  %p1662_p12 = por %p1661_p6, %p1660_p2 }
  0x23   : > { %p1656_p1 = pneg %p1655_p10 }
  0x25   : > { %p1663_p0 = pnand %p1662_p12, %p1656_p1 }
  0x27   : > { %1666 = shalt.err (!%p1663_p0)
}
  0x28   : > { %s1832_s30 = smov 64   ;;  %s1833_s9 = smov 4  }
  0x29   : > { %1543 = dma.hbm_to_vmem [thread:$0]  (!%p1926_p11), %s2186_s1, 2048, %s1919_s7, [#allocation6], %s1832_s30, %s1832_s30, %s1833_s9  }
  0x2a   : > { %s1667_s16 = scalar_lea.hbm %s2187_s2, 1024 }
  0x2b   : > { %p1668_p1 = scmp.ne.s32.totalorder %s2187_s2, %s1667_s16  ;;  %p1674_p10 = scmp.lt.u32.totalorder %s1667_s16, %s2187_s2 }
  0x2d   : > { %p1670_p2 = pnand %p1668_p1, %p1942_p13 }
  0x2f   : > { %p1671_p6 = pneg %p1670_p2 }
  0x31   : > { %p1676_p3 = pnand %p1674_p10, %p1671_p6 }
  0x33   : > { %1679 = shalt.err (!%p1676_p3)
}
  0x34   : > { %s1680_s7 = scalar_lea.vmem %s1930_s10, 1024  ;;  %p1688_p12 = scmp.lt.s32.totalorder %s1930_s10, %s1930_s10 }
  0x35   : > { %p1681_p5 = scmp.ne.s32.totalorder %s1930_s10, %s1680_s7  ;;  %p1689_p0 = scmp.lt.s32.totalorder %s1680_s7, %s1680_s7 }
  0x37   : > { %p1683_p7 = pnand %p1681_p5, %p1942_p13  ;;  %p1690_p1 = por %p1689_p0, %p1688_p12 }
  0x39   : > { %p1684_p9 = pneg %p1683_p7 }
  0x3b   : > { %p1691_p2 = pnand %p1690_p1, %p1684_p9 }
  0x3d   : > { %1694 = shalt.err (!%p1691_p2)
}
  0x3e   : > { %1546 = dma.hbm_to_vmem [thread:$0]  (!%p1926_p11), %s2187_s2, 1024, %s1930_s10, [#allocation6], %s1832_s30, %s1832_s30, %s1833_s9  }
  0x3f   : > { %s1695_s16 = scalar_lea.hbm %s2189_s4, 1024 }
  0x40   : > { %p1696_p6 = scmp.ne.s32.totalorder %s2189_s4, %s1695_s16  ;;  %p1702_p5 = scmp.lt.u32.totalorder %s1695_s16, %s2189_s4 }
  0x42   : > { %p1698_p10 = pnand %p1696_p6, %p1942_p13 }
  0x44   : > { %p1699_p3 = pneg %p1698_p10 }
  0x46   : > { %p1704_p7 = pnand %p1702_p5, %p1699_p3 }
  0x48   : > { %1707 = shalt.err (!%p1704_p7)
}
  0x49   : > { %s1708_s7 = scalar_lea.vmem %s228_s12, 1024  ;;  %p1716_p1 = scmp.lt.s32.totalorder %s228_s12, %s228_s12 }
  0x4a   : > { %p1709_p9 = scmp.ne.s32.totalorder %s228_s12, %s1708_s7  ;;  %p1717_p2 = scmp.lt.s32.totalorder %s1708_s7, %s1708_s7 }
  0x4c   : > { %p1711_p12 = pnand %p1709_p9, %p1942_p13  ;;  %p1718_p4 = por %p1717_p2, %p1716_p1 }
  0x4e   : > { %p1712_p0 = pneg %p1711_p12 }
  0x50   : > { %p1719_p8 = pnand %p1718_p4, %p1712_p0 }
  0x52   : > { %1722 = shalt.err (!%p1719_p8)
}
  0x53   : > { %1549 = dma.hbm_to_vmem [thread:$0]  (!%p1926_p11), %s2189_s4, 1024, %s228_s12, [#allocation9], %s1832_s30, %s1832_s30, %s1833_s9  }
  0x54   : > { %s2015_s18 = sadd.s32 1, %s1827_s24   ;;  %s31_s13 = sadd.s32 1, %s1823_s23 }
  0x55   : > { %s28_s8 = ssub.s32 %s1827_s24, %s2015_s18  ;;  %p38_p8 = scmp.ne.s32.totalorder %s1823_s23, %s1819_s22 }
  0x56   : > { %p29_p4 = scmp.eq.s32.totalorder %s28_s8, 0  ;;  %p39_p13 = scmp.eq.s32.totalorder %s1827_s24, 0 }
  0x57   : > { %p1561_p6 = scmp.lt.s32.totalorder %s1827_s24, 2  ;;  %p2200_p3 = scmp.eq.s32.totalorder %s1896_s25, 1 }
  0x58   : > { %s2025_s14 = scalar_select %p29_p4, %s1823_s23, %s31_s13  }
  0x59   : > { %p40_p10 = por %p39_p13, %p38_p8  ;;  %p2029_p5 = por %p2200_p3, %p38_p8 }
  0x5a   : > { %s244_s16 = sand.u32 1, %s1823_s23   ;;  %s1260_s17 = sshll.u32 %s1827_s24, 10 }
  0x5b   : > { %s1192_s12 = sshll.u32 %s244_s16, 6  ;;  %s2038_s19 = scalar_lea.hbm %s2185_s0, %s1260_s17 }
  0x5c   : > { %s248_s20 = scalar_lea.vmem [#allocation2], %s1192_s12  ;;  %p2040_p11 = pnand %p1561_p6, %p40_p10 }
  0x5d   : > { %s256_s26 = sshll.u32 %s248_s20, 4  ;;  %s2046_s10 = scalar_lea.sflag [#allocation3], %s244_s16  ;;  %s2044_s26 = int_to_ptr.vmem [resolvable:$true] %s256_s26 }
  0x5e   : > { %s1723_s11 = scalar_lea.hbm %s2038_s19, 1024  ;;  %p1725_p9 = pneg %p2040_p11 }
  0x5f   : > { %p1724_p7 = scmp.ne.s32.totalorder %s2038_s19, %s1723_s11  ;;  %s1728_s17 = scalar_lea.hbm %s2185_s0, 2048 }
  0x60   : > { %p1729_p1 = scmp.lt.u32.totalorder %s2038_s19, %s2185_s0  ;;  %p1730_p2 = scmp.lt.u32.totalorder %s1728_s17, %s1723_s11 }
  0x61   : > { %p1726_p12 = pnand %p1725_p9, %p1724_p7  ;;  %p1732_p8 = scmp.lt.u32.totalorder %s1723_s11, %s2038_s19 }
  0x62   : > { %p1731_p4 = por %p1730_p2, %p1729_p1 }
  0x63   : > { %p1727_p0 = pneg %p1726_p12 }
  0x64   : > { %p1733_p13 = por %p1732_p8, %p1731_p4 }
  0x66   : > { %p1734_p6 = pnand %p1733_p13, %p1727_p0 }
  0x68   : > { %1737 = shalt.err (!%p1734_p6)
}
  0x69   : > { %s1738_s16 = scalar_lea.vmem %s2044_s26, 1024  ;;  %s1834_s9 = smov [#allocation2]  }
  0x6a   : > { %p1739_p10 = scmp.ne.s32.totalorder %s2044_s26, %s1738_s16  ;;  %s1743_s20 = sshll.u32 %s1834_s9, 4  ;;  %s1744_s20 = int_to_ptr.vmem [resolvable:$false] %s1743_s20 }
  0x6b   : > { %s1745_s8 = scalar_lea.vmem %s1744_s20, 2048  ;;  %p1746_p12 = scmp.lt.s32.totalorder %s2044_s26, %s1744_s20 }
  0x6c   : > { %p1741_p3 = pnand %p1739_p10, %p1725_p9  ;;  %p1747_p1 = scmp.lt.s32.totalorder %s1745_s8, %s1738_s16 }
  0x6e   : > { %p1742_p7 = pneg %p1741_p3  ;;  %p1748_p2 = por %p1747_p1, %p1746_p12 }
  0x70   : > { %p1749_p4 = pnand %p1748_p2, %p1742_p7 }
  0x72   : > { %1752 = shalt.err (!%p1749_p4)
}
  0x73   : > { %s1835_s11 = smov 256   ;;  %s1836_s13 = smov 16  }
  0x74   : > { %1553 = dma.hbm_to_vmem [thread:$0]  (!%p2040_p11), %s2038_s19, 1024, %s2044_s26, %s2046_s10, %s1835_s11, %s1835_s11, %s1836_s13  }
  0x75   : > { %p2203_p9 = scmp.ne.s32.totalorder %s2197_s29, 0 }
  0x76   : > { %s2077_s17 = sand.u32 (!%p2203_p9), 1, %s1819_s22   ;;  %p2204_p0 = scmp.ne.s32.totalorder (!%p2203_p9), %s2195_s27, 0 }
  0x77   : > { %268 = sbr.rel (%p2203_p9) target bundleno = 902 (0x386), region = 44  ;;  %s1197_s12 = sshll.u32 (!%p2203_p9), %s2077_s17, 6 }
  0x78   : > { %s271_s30 = scalar_lea.sflag (!%p2203_p9), [#allocation3], %s2077_s17  ;;  %s2083_s16 = scalar_lea.vmem (!%p2203_p9), [#allocation2], %s1197_s12 }
  0x7e   : > { %1798 = dma.done.wait (%p2204_p0), %s271_s30, 1024  }
  0x7f   : > { %1800 = vsyncadd (%p2204_p0), %s271_s30, 4294966272  ;;  %p2205_p11 = scmp.eq.s32.totalorder %s1896_s25, 0 }
  0x81   : > { %1802 = dma.done.wait (%p2205_p11), [#allocation6], 3072   ;;  %p2206_p8 = pmov %p2205_p11 }
  0x83   : > { %1804 = vsyncadd (%p2206_p8), [#allocation6], 4294964224  ;;  %p2207_p13 = pmov %p2206_p8 }
  0x84   : > { %p2208_p6 = pmov %p2206_p8 }
  0x85   : > { %1806 = dma.done.wait (%p2207_p13), [#allocation9], 1024  }
  0x86   : > { %1808 = vsyncadd (%p2208_p6), [#allocation9], 4294966272  ;;  %v1607_v0 = vld [vmem:[#allocation5 + $0x40] sm:$0xff]   ;;  %v1609_v2 = vld [vmem:[#allocation5 + $0x48] sm:$0xff]   ;;  %s1202_s27 = sshll.u32 %s1896_s25, 7  ;;  %s2124_s8 = scalar_lea.vmem [#allocation10], %s1197_s12 }
  0x87   : > { %v1608_v1 = vld [vmem:[#allocation5] sm:$0xff]   ;;  %1364 = vmatprep.subr.bf16.mxu0 %v1607_v0  ;;  %v1610_v3 = vld [vmem:[#allocation5 + $0x8] sm:$0xff]   ;;  %v1611_v4 = vld [vmem:[#allocation5 + $0x50] sm:$0xff]   ;;  %s375_s29 = sshra.s32 %s1202_s27, 3  ;;  %s1082_s11 = sshll.u32 %s2124_s8, 4  ;;  %s2134_s11 = int_to_ptr.vmem [resolvable:$true] %s1082_s11 }
  0x88   : > { %1365 = vmatpush3.bf16.msra.mxu0 %v1608_v1  ;;  %v1612_v5 = vld [vmem:[#allocation5 + $0x10] sm:$0xff]   ;;  %v1613_v6 = vld [vmem:[#allocation5 + $0x58] sm:$0xff]   ;;  %v1615_v8 = vld [vmem:[#allocation5 + $0x60] sm:$0xff]   ;;  %s1203_s19 = sshll.u32 %s375_s29, 2  ;;  %s1277_s13 = sshll.u32 %s1896_s25, 10 }
  0x89   : > { %1366 = vmatprep.subr.bf16.mxu0 %v1609_v2  ;;  %v1614_v7 = vld [vmem:[#allocation5 + $0x18] sm:$0xff]   ;;  %v1616_v9 = vld [vmem:[#allocation5 + $0x20] sm:$0xff]   ;;  %v1617_v10 = vld [vmem:[#allocation5 + $0x68] sm:$0xff]   ;;  %s2106_s26 = scalar_lea.vmem [#allocation5], %s1203_s19  ;;  %s1069_s27 = scalar_lea.sflag [#allocation4], %s2077_s17 }
  0x8a   : > { %v319_v11 = vld [vmem:[%s2083_s16 + $0x8] sm:$0xff]  ;;  %v1619_v14 = vld [vmem:[#allocation5 + $0x70] sm:$0xff]   ;;  %v1623_v15 = vld [vmem:[#allocation7] sm:$0xff]   ;;  %s1753_s25 = scalar_lea.vmem %s2134_s11, 1024  ;;  %s1837_s29 = smov [#allocation10]  }
  0x8b   : > { %v327_v12 = vunpack.c.l.s8.bf16 %v319_v11  ;;  %v1618_v13 = vld [vmem:[#allocation5 + $0x28] sm:$0xff]   ;;  %v1620_v17 = vld [vmem:[#allocation5 + $0x30] sm:$0xff]   ;;  %1460 = vmatprep.subr.bf16.mxu1 %v1623_v15  ;;  %v1621_v18 = vld [vmem:[#allocation5 + $0x78] sm:$0xff]   ;;  %v329_v24 = vunpack.c.h.s8.bf16 %v319_v11  ;;  %p1754_p10 = scmp.ne.s32.totalorder %s2134_s11, %s1753_s25  ;;  %s1757_s19 = sshll.u32 %s1837_s29, 4  ;;  %s1758_s19 = int_to_ptr.vmem [resolvable:$false] %s1757_s19 }
  0x8c   : > { %1367 = vmatpush3.bf16.msra.mxu0 %v1610_v3  ;;  %v1624_v16 = vld [vmem:[#allocation7 + $0x8] sm:$0xff]   ;;  %1461 = vmatpush3.bf16.msra.mxu1 %v1623_v15  ;;  %v1625_v19 = vld [vmem:[#allocation7 + $0x10] sm:$0xff]   ;;  %v1622_v20 = vld [vmem:[#allocation5 + $0x38] sm:$0xff]   ;;  %p1760_p12 = scmp.lt.s32.totalorder %s2134_s11, %s1758_s19 }
  0x8d   : > { %1368 = vmatprep.subr.bf16.mxu0 %v1611_v4  ;;  %539 = vmatprep.mubr.bf16.mxu0 %v327_v12  ;;  %v318_v21 = vld [vmem:[%s2083_s16] sm:$0xff]  ;;  %v1626_v22 = vld [vmem:[#allocation7 + $0x18] sm:$0xff]   ;;  %v320_v28 = vld [vmem:[%s2083_s16 + $0x10] sm:$0xff]  ;;  %p1755_p3 = pnand %p1754_p10, %p2029_p5 }
  0x8e   : > { %1462 = vmatprep.subr.bf16.mxu1 %v1624_v16  ;;  %v326_v23 = vunpack.c.l.s8.bf16 %v318_v21  ;;  %v321_v25 = vld [vmem:[%s2083_s16 + $0x18] sm:$0xff]  ;;  %v328_v26 = vunpack.c.h.s8.bf16 %v318_v21  ;;  %v330_v29 = vunpack.c.l.s8.bf16 %v320_v28  ;;  %v323_v31 = vld [vmem:[%s2083_s16 + $0x28] sm:$0xff]  ;;  %v332_v32 = vunpack.c.h.s8.bf16 %v320_v28  ;;  %v322_v34 = vld [vmem:[%s2083_s16 + $0x20] sm:$0xff] }
  0x8f   : > { %v331_v27 = vunpack.c.l.s8.bf16 %v321_v25  ;;  %v333_v30 = vunpack.c.h.s8.bf16 %v321_v25  ;;  %v335_v33 = vunpack.c.l.s8.bf16 %v323_v31  ;;  %v334_v35 = vunpack.c.l.s8.bf16 %v322_v34  ;;  %v325_v37 = vld [vmem:[%s2083_s16 + $0x38] sm:$0xff]  ;;  %v324_v40 = vld [vmem:[%s2083_s16 + $0x30] sm:$0xff]  ;;  %v1627_v44 = vld [vmem:[#allocation7 + $0x20] sm:$0xff]   ;;  %s2139_s16 = scalar_lea.hbm %s2191_s6, %s1277_s13  ;;  %p1756_p7 = pneg %p1755_p3 }
  0x90   : > { %1369 = vmatpush3.bf16.msra.mxu0 %v1612_v5  ;;  %1463 = vmatpush3.bf16.msra.mxu1 %v1624_v16  ;;  %v337_v36 = vunpack.c.h.s8.bf16 %v323_v31  ;;  %v336_v38 = vunpack.c.h.s8.bf16 %v322_v34  ;;  %v339_v39 = vunpack.c.l.s8.bf16 %v325_v37  ;;  %v338_v41 = vunpack.c.l.s8.bf16 %v324_v40  ;;  %v1628_v45 = vld [vmem:[#allocation7 + $0x28] sm:$0xff]   ;;  %v1629_v46 = vld [vmem:[#allocation7 + $0x30] sm:$0xff]   ;;  %v1630_v47 = vld [vmem:[#allocation7 + $0x38] sm:$0xff]  }
  0x91   : > { %1370 = vmatprep.subr.bf16.mxu0 %v1613_v6  ;;  %1464 = vmatprep.subr.bf16.mxu1 %v1625_v19  ;;  %v341_v42 = vunpack.c.h.s8.bf16 %v325_v37  ;;  %v340_v43 = vunpack.c.h.s8.bf16 %v324_v40  ;;  %v1631_v48 = vld [vmem:[#allocation8] sm:$0xff]   ;;  %v1350_v60 = vld [vmem:[%s2106_s26 + $0x8] sm:$0xff]   ;;  %v1634_v25 = vld [vmem:[#allocation8 + $0x18] sm:$0xff]  }
  0x92   : > { %v1279_v49 = vld [vmem:[%s2106_s26] sm:$0xff]   ;;  %v1284_v0 = vunpack.c.l.bf16 %v1350_v60  ;;  %v1285_v3 = vunpack.c.h.bf16 %v1350_v60  ;;  %v1632_v11 = vld [vmem:[#allocation8 + $0x8] sm:$0xff]  }
  0x93   : > { %v1280_v54 = vunpack.c.l.bf16 %v1279_v49  ;;  %v1281_v55 = vunpack.c.h.bf16 %v1279_v49  ;;  %v1354_v49 = vld [vmem:[%s2106_s26 + $0x28] sm:$0xff]  }
  0x94   : > { %1371 = vmatpush3.bf16.msra.mxu0 %v1614_v7  ;;  %1465 = vmatpush3.bf16.msra.mxu1 %v1625_v19  ;;  %v1633_v19 = vld [vmem:[#allocation8 + $0x10] sm:$0xff]  }
  0x95   : > { %1372 = vmatprep.subr.bf16.mxu0 %v1615_v8  ;;  %1466 = vmatprep.subr.bf16.mxu1 %v1626_v22  ;;  %v1351_v8 = vld [vmem:[%s2106_s26 + $0x10] sm:$0xff]  }
  0x96   : > { %v1289_v16 = vunpack.c.h.bf16 %v1351_v8 }
  0x98   : > { %1373 = vmatpush3.bf16.msra.mxu0 %v1616_v9  ;;  %1467 = vmatpush3.bf16.msra.mxu1 %v1626_v22  ;;  %v1352_v22 = vld [vmem:[%s2106_s26 + $0x18] sm:$0xff]  }
  0x99   : > { %1374 = vmatprep.subr.bf16.mxu0 %v1617_v10  ;;  %1468 = vmatprep.subr.bf16.mxu1 %v1627_v44 }
  0x9c   : > { %1375 = vmatpush3.bf16.msra.mxu0 %v1618_v13  ;;  %1469 = vmatpush3.bf16.msra.mxu1 %v1627_v44  ;;  %v1288_v13 = vunpack.c.l.bf16 %v1351_v8 }
  0x9d   : > { %1376 = vmatprep.subr.bf16.mxu0 %v1619_v14  ;;  %1470 = vmatprep.subr.bf16.mxu1 %v1628_v45 }
  0xa0   : > { %1377 = vmatpush3.bf16.msra.mxu0 %v1620_v17  ;;  %1471 = vmatpush3.bf16.msra.mxu1 %v1628_v45 }
  0xa1   : > { %1378 = vmatprep.subr.bf16.mxu0 %v1621_v18  ;;  %1472 = vmatprep.subr.bf16.mxu1 %v1629_v46 }
  0xa4   : > { %1379 = vmatpush3.bf16.msra.mxu0 %v1622_v20  ;;  %1473 = vmatpush3.bf16.msra.mxu1 %v1629_v46 }
  0xa5   : > { %1474 = vmatprep.subr.bf16.mxu1 %v1630_v47 }
  0xa7   : > { %540 = vmatmul.mubr.bf16.vlgmr.msra.gmra.mrb[0].mxu0 %v326_v23 }
  0xa8   : > { %547 = vmatprep.mubr.bf16.mxu0 %v329_v24  ;;  %1475 = vmatpush3.bf16.msra.mxu1 %v1630_v47 }
  0xa9   : > { %1492 = vmatprep.subr.bf16.mxu1 %v1631_v48 }
  0xaf   : > { %548 = vmatmul.mubr.bf16.gmra.mrb[4].mxu0 %v328_v26 }
  0xb0   : > { %555 = vmatprep.mubr.bf16.mxu0 %v331_v27  ;;  %v1292_v27 = vunpack.c.l.bf16 %v1352_v22 }
  0xb7   : > { %556 = vmatmul.mubr.bf16.gmra.mrb[8].mxu0 %v330_v29 }
  0xb8   : > { %563 = vmatprep.mubr.bf16.mxu0 %v333_v30  ;;  %v1293_v30 = vunpack.c.h.bf16 %v1352_v22  ;;  %v1637_v22 = vld [vmem:[#allocation8 + $0x30] sm:$0xff]  }
  0xbf   : > { %564 = vmatmul.mubr.bf16.gmra.mrb[12].mxu0 %v332_v32 }
  0xc0   : > { %571 = vmatprep.mubr.bf16.mxu0 %v335_v33  ;;  %v1635_v33 = vld [vmem:[#allocation8 + $0x20] sm:$0xff]  }
  0xc7   : > { %572 = vmatmul.mubr.bf16.gmra.mrb[16].mxu0 %v334_v35 }
  0xc8   : > { %579 = vmatprep.mubr.bf16.mxu0 %v337_v36  ;;  %v1353_v36 = vld [vmem:[%s2106_s26 + $0x20] sm:$0xff]  }
  0xc9   : > { %v1297_v44 = vunpack.c.h.bf16 %v1353_v36 }
  0xcf   : > { %580 = vmatmul.mubr.bf16.gmra.mrb[20].mxu0 %v336_v38 }
  0xd0   : > { %587 = vmatprep.mubr.bf16.mxu0 %v339_v39  ;;  %v1636_v39 = vld [vmem:[#allocation8 + $0x28] sm:$0xff]  }
  0xd7   : > { %588 = vmatmul.mubr.bf16.gmra.mrb[24].mxu0 %v338_v41  ;;  %v1296_v41 = vunpack.c.l.bf16 %v1353_v36 }
  0xd8   : > { %595 = vmatprep.mubr.bf16.mxu0 %v341_v42 }
  0xdf   : > { %596 = vmatmul.mubr.bf16.gmra.mrb[28].mxu0 %v340_v43 }
 0x17a   : > { %v1380_v50 = vpop.f32.mrb[0].mxu0 }
 0x17b   : > { %v1381_v51 = vpop.f32.mrb[1].mxu0 }
 0x17c   : > { %v1382_v52 = vadd.f32 %v1381_v51, %v1380_v50  ;;  %v1383_v53 = vpop.f32.mrb[2].mxu0 }
 0x17d   : > { %v1384_v56 = vpop.f32.mrb[3].mxu0 }
 0x17e   : > { %v1385_v57 = vadd.f32 %v1384_v56, %v1383_v53  ;;  %v542_v58 = vadd.f32 %v1382_v52, %v1280_v54  ;;  %v1300_v53 = vunpack.c.l.bf16 %v1354_v49  ;;  %v1301_v56 = vunpack.c.h.bf16 %v1354_v49 }
 0x180   : > { %v545_v59 = vadd.f32 %v1385_v57, %v1281_v55 }
 0x182   : > { %v1386_v61 = vpop.f32.mrb[4].mxu0  ;;  %v604_v62 = vpack.c.bf16 %v545_v59, %v542_v58 }
 0x183   : > { %v1387_v63 = vpop.f32.mrb[5].mxu0 }
 0x184   : > { %v1388_v1 = vadd.f32 %v1387_v63, %v1386_v61  ;;  %v1389_v2 = vpop.f32.mrb[6].mxu0  ;;  %1476 = vmatprep.mubr.bf16.mxu1 %v604_v62  ;;  %v1355_v61 = vld [vmem:[%s2106_s26 + $0x30] sm:$0xff]  }
 0x185   : > { %v1390_v4 = vpop.f32.mrb[7].mxu0 }
 0x186   : > { %v1391_v5 = vadd.f32 %v1390_v4, %v1389_v2  ;;  %v550_v6 = vadd.f32 %v1388_v1, %v1284_v0  ;;  %v1304_v1 = vunpack.c.l.bf16 %v1355_v61  ;;  %v1305_v4 = vunpack.c.h.bf16 %v1355_v61 }
 0x188   : > { %v553_v7 = vadd.f32 %v1391_v5, %v1285_v3 }
 0x18a   : > { %v1392_v9 = vpop.f32.mrb[8].mxu0  ;;  %v605_v10 = vpack.c.bf16 %v553_v7, %v550_v6 }
 0x18b   : > { %v1393_v12 = vpop.f32.mrb[9].mxu0 }
 0x18c   : > { %v1394_v14 = vadd.f32 %v1393_v12, %v1392_v9  ;;  %v1395_v15 = vpop.f32.mrb[10].mxu0  ;;  %1477 = vmatmul.mubr.bf16.vlgmr.msra.gmra.mrb[0].mxu1 %v605_v10  ;;  %v1356_v9 = vld [vmem:[%s2106_s26 + $0x38] sm:$0xff]   ;;  %s1759_s26 = scalar_lea.vmem %s1758_s19, 2048 }
 0x18d   : > { %v1396_v17 = vpop.f32.mrb[11].mxu0  ;;  %1493 = vmatpush3.bf16.msra.mxu1 %v1631_v48  ;;  %p1761_p1 = scmp.lt.s32.totalorder %s1759_s26, %s1753_s25 }
 0x18e   : > { %v1397_v18 = vadd.f32 %v1396_v17, %v1395_v15  ;;  %1494 = vmatprep.subr.bf16.mxu1 %v1632_v11  ;;  %v558_v20 = vadd.f32 %v1394_v14, %v1288_v13  ;;  %v1308_v13 = vunpack.c.l.bf16 %v1356_v9 }
 0x18f   : > { %p1762_p2 = por %p1761_p1, %p1760_p12 }
 0x190   : > { %v561_v21 = vadd.f32 %v1397_v18, %v1289_v16  ;;  %v1309_v16 = vunpack.c.h.bf16 %v1356_v9 }
 0x191   : > { %1495 = vmatpush3.bf16.msra.mxu1 %v1632_v11  ;;  %p1763_p4 = pnand %p1762_p2, %p1756_p7 }
 0x192   : > { %v1398_v23 = vpop.f32.mrb[12].mxu0  ;;  %v606_v24 = vpack.c.bf16 %v561_v21, %v558_v20  ;;  %1496 = vmatprep.subr.bf16.mxu1 %v1633_v19 }
 0x193   : > { %v1399_v26 = vpop.f32.mrb[13].mxu0 }
 0x194   : > { %v1400_v28 = vadd.f32 %v1399_v26, %v1398_v23  ;;  %v1401_v29 = vpop.f32.mrb[14].mxu0  ;;  %1480 = vmatprep.mubr.bf16.mxu1 %v606_v24  ;;  %v1638_v23 = vld [vmem:[#allocation8 + $0x38] sm:$0xff]   ;;  %v1220_v24 = vld [vmem:[%s2188_s3] ss:$0 sm:$0xff] }
 0x195   : > { %v1402_v31 = vpop.f32.mrb[15].mxu0  ;;  %1497 = vmatpush3.bf16.msra.mxu1 %v1633_v19 }
 0x196   : > { %v1403_v32 = vadd.f32 %v1402_v31, %v1401_v29  ;;  %1498 = vmatprep.subr.bf16.mxu1 %v1634_v25  ;;  %v566_v34 = vadd.f32 %v1400_v28, %v1292_v27 }
 0x198   : > { %v569_v35 = vadd.f32 %v1403_v32, %v1293_v30 }
 0x199   : > { %1499 = vmatpush3.bf16.msra.mxu1 %v1634_v25 }
 0x19a   : > { %v1404_v37 = vpop.f32.mrb[16].mxu0  ;;  %v607_v38 = vpack.c.bf16 %v569_v35, %v566_v34  ;;  %1500 = vmatprep.subr.bf16.mxu1 %v1635_v33 }
 0x19b   : > { %v1405_v40 = vpop.f32.mrb[17].mxu0 }
 0x19c   : > { %v1406_v42 = vadd.f32 %v1405_v40, %v1404_v37  ;;  %v1407_v43 = vpop.f32.mrb[18].mxu0  ;;  %1481 = vmatmul.mubr.bf16.gmra.mrb[4].mxu1 %v607_v38 }
 0x19d   : > { %v1408_v45 = vpop.f32.mrb[19].mxu0  ;;  %1501 = vmatpush3.bf16.msra.mxu1 %v1635_v33 }
 0x19e   : > { %v1409_v46 = vadd.f32 %v1408_v45, %v1407_v43  ;;  %1502 = vmatprep.subr.bf16.mxu1 %v1636_v39  ;;  %v574_v47 = vadd.f32 %v1406_v42, %v1296_v41 }
 0x1a0   : > { %v577_v48 = vadd.f32 %v1409_v46, %v1297_v44 }
 0x1a1   : > { %1503 = vmatpush3.bf16.msra.mxu1 %v1636_v39 }
 0x1a2   : > { %v1410_v50 = vpop.f32.mrb[20].mxu0  ;;  %v608_v51 = vpack.c.bf16 %v577_v48, %v574_v47  ;;  %1504 = vmatprep.subr.bf16.mxu1 %v1637_v22 }
 0x1a3   : > { %v1411_v52 = vpop.f32.mrb[21].mxu0 }
 0x1a4   : > { %v1412_v54 = vadd.f32 %v1411_v52, %v1410_v50  ;;  %v1413_v55 = vpop.f32.mrb[22].mxu0  ;;  %1484 = vmatprep.mubr.bf16.mxu1 %v608_v51 }
 0x1a5   : > { %v1414_v57 = vpop.f32.mrb[23].mxu0  ;;  %1505 = vmatpush3.bf16.msra.mxu1 %v1637_v22 }
 0x1a6   : > { %v1415_v58 = vadd.f32 %v1414_v57, %v1413_v55  ;;  %v582_v59 = vadd.f32 %v1412_v54, %v1300_v53  ;;  %1506 = vmatprep.subr.bf16.mxu1 %v1638_v23 }
 0x1a8   : > { %v585_v60 = vadd.f32 %v1415_v58, %v1301_v56 }
 0x1a9   : > { %1507 = vmatpush3.bf16.msra.mxu1 %v1638_v23 }
 0x1aa   : > { %v1416_v62 = vpop.f32.mrb[24].mxu0  ;;  %v609_v63 = vpack.c.bf16 %v585_v60, %v582_v59 }
 0x1ab   : > { %v1417_v0 = vpop.f32.mrb[25].mxu0 }
 0x1ac   : > { %v1418_v2 = vadd.f32 %v1417_v0, %v1416_v62  ;;  %v1419_v3 = vpop.f32.mrb[26].mxu0  ;;  %1485 = vmatmul.mubr.bf16.gmra.mrb[8].mxu1 %v609_v63 }
 0x1ad   : > { %v1420_v5 = vpop.f32.mrb[27].mxu0 }
 0x1ae   : > { %v1421_v6 = vadd.f32 %v1420_v5, %v1419_v3  ;;  %v590_v7 = vadd.f32 %v1418_v2, %v1304_v1 }
 0x1b0   : > { %v593_v8 = vadd.f32 %v1421_v6, %v1305_v4 }
 0x1b2   : > { %v1422_v10 = vpop.f32.mrb[28].mxu0  ;;  %v610_v11 = vpack.c.bf16 %v593_v8, %v590_v7 }
 0x1b3   : > { %v1423_v12 = vpop.f32.mrb[29].mxu0 }
 0x1b4   : > { %v1424_v14 = vadd.f32 %v1423_v12, %v1422_v10  ;;  %v1425_v15 = vpop.f32.mrb[30].mxu0  ;;  %1488 = vmatprep.mubr.bf16.mxu1 %v610_v11 }
 0x1b5   : > { %v1426_v17 = vpop.f32.mrb[31].mxu0 }
 0x1b6   : > { %v1427_v18 = vadd.f32 %v1426_v17, %v1425_v15  ;;  %v598_v19 = vadd.f32 %v1424_v14, %v1308_v13  ;;  %v1229_v17 = vld [vmem:[%s2190_s5] ss:$0 sm:$0xff] }
 0x1b8   : > { %v601_v20 = vadd.f32 %v1427_v18, %v1309_v16 }
 0x1ba   : > { %v611_v21 = vpack.c.bf16 %v601_v20, %v598_v19 }
 0x1bc   : > { %1489 = vmatmul.mubr.bf16.gmra.mrb[12].mxu1 %v611_v21 }
 0x25f   : > { %v1478_v25 = vpop.f32.mrb[0].mxu1 }
 0x260   : > { %v726_v26 = vadd.f32 %v1478_v25, %v1220_v24  ;;  %v717_v27 = vpop.f32.mrb[1].mxu1 }
 0x261   : > { %v718_v28 = vadd.f32 %v1220_v24, %v717_v27  ;;  %v1479_v29 = vpop.f32.mrb[2].mxu1 }
 0x262   : > { %v729_v30 = vadd.f32 %v1479_v29, %v1220_v24  ;;  %v720_v31 = vpop.f32.mrb[3].mxu1  ;;  %v782_v33 = vmax.f32 %v726_v26, 0.0 }
 0x263   : > { %v721_v32 = vadd.f32 %v1220_v24, %v720_v31  ;;  %v780_v35 = vmax.f32 %v718_v28, 0.0 }
 0x264   : > { %v783_v34 = vmax.f32 %v729_v30, 0.0 }
 0x265   : > { %v781_v36 = vmax.f32 %v721_v32, 0.0 }
 0x266   : > { %v797_v37 = vpack.c.bf16 %v783_v34, %v782_v33 }
 0x267   : > { %v796_v38 = vpack.c.bf16 %v781_v36, %v780_v35 }
 0x269   : > { %1508 = vmatprep.mubr.bf16.mxu1 %v796_v38 }
 0x26a   : > { %1509 = vmatmul.mubr.bf16.vlgmr.msra.gmra.mrb[16].mxu1 %v797_v37 }
 0x26f   : > { %v1482_v39 = vpop.f32.mrb[4].mxu1 }
 0x270   : > { %v742_v40 = vadd.f32 %v1482_v39, %v1220_v24  ;;  %v733_v41 = vpop.f32.mrb[5].mxu1 }
 0x271   : > { %v734_v42 = vadd.f32 %v1220_v24, %v733_v41  ;;  %v1483_v43 = vpop.f32.mrb[6].mxu1 }
 0x272   : > { %v745_v44 = vadd.f32 %v1483_v43, %v1220_v24  ;;  %v736_v45 = vpop.f32.mrb[7].mxu1  ;;  %v786_v47 = vmax.f32 %v742_v40, 0.0 }
 0x273   : > { %v737_v46 = vadd.f32 %v1220_v24, %v736_v45  ;;  %v784_v49 = vmax.f32 %v734_v42, 0.0 }
 0x274   : > { %v787_v48 = vmax.f32 %v745_v44, 0.0 }
 0x275   : > { %v785_v50 = vmax.f32 %v737_v46, 0.0 }
 0x276   : > { %v799_v51 = vpack.c.bf16 %v787_v48, %v786_v47 }
 0x277   : > { %v798_v52 = vpack.c.bf16 %v785_v50, %v784_v49 }
 0x279   : > { %1512 = vmatprep.mubr.bf16.mxu1 %v798_v52 }
 0x27a   : > { %1513 = vmatmul.mubr.bf16.gmra.mrb[20].mxu1 %v799_v51 }
 0x27f   : > { %v1486_v53 = vpop.f32.mrb[8].mxu1 }
 0x280   : > { %v758_v54 = vadd.f32 %v1486_v53, %v1220_v24  ;;  %v749_v55 = vpop.f32.mrb[9].mxu1 }
 0x281   : > { %v750_v56 = vadd.f32 %v1220_v24, %v749_v55  ;;  %v1487_v57 = vpop.f32.mrb[10].mxu1 }
 0x282   : > { %v761_v58 = vadd.f32 %v1487_v57, %v1220_v24  ;;  %v752_v59 = vpop.f32.mrb[11].mxu1  ;;  %v790_v61 = vmax.f32 %v758_v54, 0.0 }
 0x283   : > { %v753_v60 = vadd.f32 %v1220_v24, %v752_v59  ;;  %v788_v63 = vmax.f32 %v750_v56, 0.0 }
 0x284   : > { %v791_v62 = vmax.f32 %v761_v58, 0.0 }
 0x285   : > { %v789_v0 = vmax.f32 %v753_v60, 0.0 }
 0x286   : > { %v801_v1 = vpack.c.bf16 %v791_v62, %v790_v61 }
 0x287   : > { %v800_v2 = vpack.c.bf16 %v789_v0, %v788_v63 }
 0x289   : > { %1516 = vmatprep.mubr.bf16.mxu1 %v800_v2 }
 0x28a   : > { %1517 = vmatmul.mubr.bf16.gmra.mrb[24].mxu1 %v801_v1 }
 0x28f   : > { %v1490_v3 = vpop.f32.mrb[12].mxu1 }
 0x290   : > { %v774_v4 = vadd.f32 %v1490_v3, %v1220_v24  ;;  %v765_v5 = vpop.f32.mrb[13].mxu1 }
 0x291   : > { %v766_v6 = vadd.f32 %v1220_v24, %v765_v5  ;;  %v1491_v7 = vpop.f32.mrb[14].mxu1 }
 0x292   : > { %v777_v8 = vadd.f32 %v1491_v7, %v1220_v24  ;;  %v768_v9 = vpop.f32.mrb[15].mxu1  ;;  %v794_v11 = vmax.f32 %v774_v4, 0.0 }
 0x293   : > { %v769_v10 = vadd.f32 %v1220_v24, %v768_v9  ;;  %v792_v13 = vmax.f32 %v766_v6, 0.0 }
 0x294   : > { %v795_v12 = vmax.f32 %v777_v8, 0.0 }
 0x295   : > { %v793_v14 = vmax.f32 %v769_v10, 0.0 }
 0x296   : > { %v803_v15 = vpack.c.bf16 %v795_v12, %v794_v11 }
 0x297   : > { %v802_v16 = vpack.c.bf16 %v793_v14, %v792_v13 }
 0x299   : > { %1520 = vmatprep.mubr.bf16.mxu1 %v802_v16 }
 0x29a   : > { %1521 = vmatmul.mubr.bf16.gmra.mrb[28].mxu1 %v803_v15 }
 0x33d   : > { %v1510_v18 = vpop.f32.mrb[16].mxu1 }
 0x33e   : > { %v918_v19 = vadd.f32 %v1510_v18, %v1229_v17  ;;  %v909_v20 = vpop.f32.mrb[17].mxu1 }
 0x33f   : > { %v910_v21 = vadd.f32 %v1229_v17, %v909_v20  ;;  %v1511_v22 = vpop.f32.mrb[18].mxu1 }
 0x340   : > { %v921_v23 = vadd.f32 %v1511_v22, %v1229_v17  ;;  %v912_v24 = vpop.f32.mrb[19].mxu1  ;;  %v974_v26 = vmax.f32 %v918_v19, 0.0 }
 0x341   : > { %v913_v25 = vadd.f32 %v1229_v17, %v912_v24  ;;  %v972_v28 = vmax.f32 %v910_v21, 0.0 }
 0x342   : > { %v975_v27 = vmax.f32 %v921_v23, 0.0 }
 0x343   : > { %v973_v29 = vmax.f32 %v913_v25, 0.0 }
 0x344   : > { %v1318_v30 = vpack.c.bf16 %v975_v27, %v974_v26 }
 0x345   : > { %v1313_v31 = vpack.c.bf16 %v973_v29, %v972_v28 }
 0x346   : > { %1357 = vst [vmem:[%s2124_s8 + $0x8] sm:$0xff] %v1318_v30  }
 0x347   : > { %1314 = vst [vmem:[%s2124_s8] sm:$0xff] %v1313_v31  }
 0x34d   : > { %v1514_v32 = vpop.f32.mrb[20].mxu1 }
 0x34e   : > { %v934_v33 = vadd.f32 %v1514_v32, %v1229_v17  ;;  %v925_v34 = vpop.f32.mrb[21].mxu1 }
 0x34f   : > { %v926_v35 = vadd.f32 %v1229_v17, %v925_v34  ;;  %v1515_v36 = vpop.f32.mrb[22].mxu1 }
 0x350   : > { %v937_v37 = vadd.f32 %v1515_v36, %v1229_v17  ;;  %v928_v38 = vpop.f32.mrb[23].mxu1  ;;  %v978_v40 = vmax.f32 %v934_v33, 0.0 }
 0x351   : > { %v929_v39 = vadd.f32 %v1229_v17, %v928_v38  ;;  %v976_v42 = vmax.f32 %v926_v35, 0.0 }
 0x352   : > { %v979_v41 = vmax.f32 %v937_v37, 0.0 }
 0x353   : > { %v977_v43 = vmax.f32 %v929_v39, 0.0 }
 0x354   : > { %v1328_v44 = vpack.c.bf16 %v979_v41, %v978_v40 }
 0x355   : > { %v1323_v45 = vpack.c.bf16 %v977_v43, %v976_v42 }
 0x356   : > { %1359 = vst [vmem:[%s2124_s8 + $0x18] sm:$0xff] %v1328_v44  }
 0x357   : > { %1358 = vst [vmem:[%s2124_s8 + $0x10] sm:$0xff] %v1323_v45  }
 0x35d   : > { %v1518_v46 = vpop.f32.mrb[24].mxu1 }
 0x35e   : > { %v950_v47 = vadd.f32 %v1518_v46, %v1229_v17  ;;  %v941_v48 = vpop.f32.mrb[25].mxu1 }
 0x35f   : > { %v942_v49 = vadd.f32 %v1229_v17, %v941_v48  ;;  %v1519_v50 = vpop.f32.mrb[26].mxu1 }
 0x360   : > { %v953_v51 = vadd.f32 %v1519_v50, %v1229_v17  ;;  %v944_v52 = vpop.f32.mrb[27].mxu1  ;;  %v982_v54 = vmax.f32 %v950_v47, 0.0 }
 0x361   : > { %v945_v53 = vadd.f32 %v1229_v17, %v944_v52  ;;  %v980_v56 = vmax.f32 %v942_v49, 0.0 }
 0x362   : > { %v983_v55 = vmax.f32 %v953_v51, 0.0 }
 0x363   : > { %v981_v57 = vmax.f32 %v945_v53, 0.0 }
 0x364   : > { %v1338_v58 = vpack.c.bf16 %v983_v55, %v982_v54 }
 0x365   : > { %v1333_v59 = vpack.c.bf16 %v981_v57, %v980_v56 }
 0x366   : > { %1361 = vst [vmem:[%s2124_s8 + $0x28] sm:$0xff] %v1338_v58  }
 0x367   : > { %1360 = vst [vmem:[%s2124_s8 + $0x20] sm:$0xff] %v1333_v59  }
 0x36d   : > { %v1522_v60 = vpop.f32.mrb[28].mxu1 }
 0x36e   : > { %v966_v61 = vadd.f32 %v1522_v60, %v1229_v17  ;;  %v957_v62 = vpop.f32.mrb[29].mxu1 }
 0x36f   : > { %v958_v63 = vadd.f32 %v1229_v17, %v957_v62  ;;  %v1523_v0 = vpop.f32.mrb[30].mxu1 }
 0x370   : > { %v969_v1 = vadd.f32 %v1523_v0, %v1229_v17  ;;  %v960_v2 = vpop.f32.mrb[31].mxu1  ;;  %v986_v4 = vmax.f32 %v966_v61, 0.0 }
 0x371   : > { %v961_v3 = vadd.f32 %v1229_v17, %v960_v2  ;;  %v984_v6 = vmax.f32 %v958_v63, 0.0 }
 0x372   : > { %v987_v5 = vmax.f32 %v969_v1, 0.0 }
 0x373   : > { %v985_v7 = vmax.f32 %v961_v3, 0.0 }
 0x374   : > { %v1348_v8 = vpack.c.bf16 %v987_v5, %v986_v4 }
 0x375   : > { %v1343_v9 = vpack.c.bf16 %v985_v7, %v984_v6 }
 0x376   : > { %1363 = vst [vmem:[%s2124_s8 + $0x38] sm:$0xff] %v1348_v8  }
 0x377   : > { %1362 = vst [vmem:[%s2124_s8 + $0x30] sm:$0xff] %v1343_v9  }
 0x378   : > { %1766 = shalt.err (!%p1763_p4)
}
 0x379   : > { %s1767_s7 = scalar_lea.hbm %s2139_s16, 1024  ;;  %s1771_s20 = scalar_lea.hbm %s2191_s6, 2048 }
 0x37a   : > { %p1768_p9 = scmp.ne.s32.totalorder %s2139_s16, %s1767_s7  ;;  %p1772_p8 = scmp.lt.u32.totalorder %s2139_s16, %s2191_s6 }
 0x37b   : > { %p1773_p13 = scmp.lt.u32.totalorder %s1771_s20, %s1767_s7  ;;  %p1775_p10 = scmp.lt.u32.totalorder %s1767_s7, %s2139_s16 }
 0x37c   : > { %p1769_p0 = pnand %p1768_p9, %p2029_p5 }
 0x37d   : > { %p1774_p6 = por %p1773_p13, %p1772_p8 }
 0x37e   : > { %p1770_p11 = pneg %p1769_p0 }
 0x37f   : > { %p1776_p3 = por %p1775_p10, %p1774_p6 }
 0x381   : > { %p1777_p7 = pnand %p1776_p3, %p1770_p11 }
 0x383   : > { %1780 = shalt.err (!%p1777_p7)
}
 0x384   : > { %s1838_s12 = smov 64   ;;  %s1839_s30 = smov 4  }
 0x385   : > { %1538 = dma.vmem_to_hbm [thread:$0]  (%p2029_p5), %s2134_s11, 1024, %s2139_s16, %s1069_s27, %s1838_s12, %s1838_s12, %s1839_s30  }
 0x386 PF: > { %s1097_s25 = sand.u32 1, %s1815_s21   ;;  %p2209_p12 = scmp.ne.s32.totalorder %s2196_s28, 0 }
 0x387   : > { %p2210_p1 = scmp.ge.s32.totalorder %s1827_s24, 2  ;;  %s1098_s29 = scalar_lea.sflag [#allocation4], %s1097_s25 }
 0x389   : > { %p1555_p2 = pnand %p2210_p1, %p2209_p12 }
 0x38b   : > { %1810 = dma.done.wait (!%p1555_p2), %s1098_s29, 1024  }
 0x38c   : > { %1812 = vsyncadd (!%p1555_p2), %s1098_s29, 4294966272  ;;  %p21_p4 = scmp.ge.s32.totalorder %s2015_s18, 4   ;;  %s2211_s21 = smov %s1819_s22 }
 0x38d   : > { %s2212_s22 = smov %s1823_s23  ;;  %s2213_s23 = smov %s2025_s14 }
 0x38e   : > { %s2214_s24 = smov %s2015_s18  ;;  %23 = sbr.rel (!%p21_p4) target bundleno = 7 (0x7), region = 102 }
 0x395   :  { %1103 = vsyncpa [#allocation3], 1 }
 0x396   :  { %1105 = vsyncpa [#allocation3 + $0x1], 1 }
 0x397   :  { %1106 = vsyncpa [#allocation6], 1 }
 0x398   :  { %1107 = vsyncpa [#allocation9], 1 }
 0x399   :  { %1108 = vsyncpa [#allocation4], 1 }
 0x39a   :  { %1110 = vsyncpa [#allocation4 + $0x1], 1 }

</bundles_post_ra>
